<compile_context>
chip_gen: v5e
topology: v5e:2x2
jax: 0.10.0
libtpu: 0.0.40
codegen_flags: <defaults>
</compile_context>

<pallas_src>
import jax
import jax.numpy as jnp
import numpy as np
from jax.experimental import pallas as pl
from jax.experimental.pallas import tpu as pltpu


# ------------------------------ kernel ------------------------------
def encoder_cada_kernel(
    x_ref, att_ref, eps_x_ref, eps_att_ref,          # batch-tiled activations / noise
    w1_ref, b1_ref, whx_ref, bhx_ref,                # feature branch (resident VMEM)
    w2_ref, b2_ref, wha_ref, bha_ref,                # attribute branch (resident VMEM)
    zx_ref, zatt_ref, headx_ref, heada_ref,          # outputs: z and fused [mu|logvar]
):
    zp = zx_ref.shape[-1]   # padded z width (128-lane multiple)

    def branch(inp_ref, w_ref, b_ref, wh_ref, bh_ref, eps_ref, z_ref, head_ref):
        # Linear + ReLU: bf16 MXU matmul, f32 accumulate, f32 bias / epilogue.
        h = jnp.dot(inp_ref[...], w_ref[...], preferred_element_type=jnp.float32)
        h = jnp.maximum(h + b_ref[...], 0.0).astype(wh_ref.dtype)
        # Fused [mu | logvar] head: single matmul, single lane-dense (TM, 2*ZP) store.
        head = jnp.dot(h, wh_ref[...], preferred_element_type=jnp.float32) + bh_ref[...]
        head_ref[...] = head
        # Reparameterize: sigma = exp(logvar); eps is a (TM, 1) f32 column
        # broadcast across lanes (cheap VPU broadcast, done once per step).
        eps = eps_ref[...]
        # NOTE: padded z columns of z (cols z..ZP) hold exp(0)*eps; cropped in wrapper.
        z_ref[...] = head[:, :zp] + jnp.exp(head[:, zp:]) * eps

    branch(x_ref, w1_ref, b1_ref, whx_ref, bhx_ref, eps_x_ref, zx_ref, headx_ref)
    branch(att_ref, w2_ref, b2_ref, wha_ref, bha_ref, eps_att_ref, zatt_ref, heada_ref)


# ------------------------------ helpers ------------------------------
def _round_up(v, m):
    return ((v + m - 1) // m) * m


def _pad2(a, rows, cols, dtype):
    a = a.astype(dtype)
    return jnp.pad(a, ((0, rows - a.shape[0]), (0, cols - a.shape[1])))


# --------------------- one-time weight preparation ---------------------
def prepare_params(params, compute_dtype=jnp.bfloat16):
    """Pad / cast / fuse the weights ONCE.  Call outside the forward path."""
    f32 = jnp.float32
    cd = compute_dtype

    input_dim, hid_x = params["w1"].shape
    atts_dim, hid_a = params["w2"].shape
    z = params["wmu_x"].shape[1]

    INP = _round_up(input_dim, 128)
    ATP = _round_up(atts_dim, 128)
    HXP = _round_up(hid_x, 128)
    HAP = _round_up(hid_a, 128)
    ZP = _round_up(z, 128)

    prepared = {
        # feature branch
        "w1": _pad2(params["w1"], INP, HXP, cd),
        "b1": _pad2(params["b1"], 1, HXP, f32),
        "wh_x": jnp.concatenate([_pad2(params["wmu_x"], HXP, ZP, cd),
                                 _pad2(params["wlv_x"], HXP, ZP, cd)], axis=1),
        "bh_x": jnp.concatenate([_pad2(params["bmu_x"], 1, ZP, f32),
                                 _pad2(params["blv_x"], 1, ZP, f32)], axis=1),
        # attribute branch
        "w2": _pad2(params["w2"], ATP, HAP, cd),
        "b2": _pad2(params["b2"], 1, HAP, f32),
        "wh_a": jnp.concatenate([_pad2(params["wmu_a"], HAP, ZP, cd),
                                 _pad2(params["wlv_a"], HAP, ZP, cd)], axis=1),
        "bh_a": jnp.concatenate([_pad2(params["bmu_a"], 1, ZP, f32),
                                 _pad2(params["blv_a"], 1, ZP, f32)], axis=1),
        "dims": dict(input_dim=input_dim, atts_dim=atts_dim, z=z,
                     INP=INP, ATP=ATP, HXP=HXP, HAP=HAP, ZP=ZP),
        "compute_dtype": cd,
    }
    return jax.tree_util.tree_map(
        lambda a: a if not isinstance(a, jnp.ndarray) else jnp.asarray(a), prepared)


def _vmem_limit_bytes(TM, INP, ATP, HXP, HAP, ZP, cd_bytes):
    """Conservative footprint estimate: resident weights + double-buffered
    activation/output tiles + in-flight f32/bf16 temps.  Capped at 48 MiB to
    keep headroom on v7x (64 MiB physical per TC)."""
    f32b = 4
    weights = (INP * HXP + HXP * 2 * ZP + ATP * HAP + HAP * 2 * ZP) * cd_bytes
    biases = (HXP + HAP + 4 * ZP) * f32b
    ins = 2 * (TM * INP + TM * ATP) * cd_bytes + 2 * 2 * TM * f32b
    outs = 2 * (6 * TM * ZP) * f32b
    temps = 2 * (TM * max(HXP, HAP) * (f32b + cd_bytes) + TM * 2 * ZP * f32b)
    est = int(1.3 * (weights + biases + ins + outs + temps)) + (2 << 20)
    return min(48 << 20, max(32 << 20, est))


# ------------------------------ forward ------------------------------
def encoder_cada_forward(x, att, eps_x, eps_att, prepared, *, block_rows=512):
    """Fused forward on pre-prepared weights.

    Returns (z_x, z_att, mu_x, logvar_x, mu_att, logvar_att)."""
    f32 = jnp.float32
    cd = prepared["compute_dtype"]
    d = prepared["dims"]
    input_dim, atts_dim, z = d["input_dim"], d["atts_dim"], d["z"]
    INP, ATP, ZP = d["INP"], d["ATP"], d["ZP"]
    HXP, HAP = d["HXP"], d["HAP"]

    B = x.shape[0]

    # Batch tiling: pick TM <= block_rows but also small enough that the grid
    # has >= 2 steps when B allows (keeps both v7x TensorCores busy, balanced).
    B8 = _round_up(B, 8)
    tm_cap = max(8, _round_up((B8 + 1) // 2, 8))
    TM = min(_round_up(block_rows, 8), tm_cap)
    BP = _round_up(B, TM)
    grid = (BP // TM,)

    # Per-call tensor prep is now only the (small) activations / noise.
    xp = _pad2(x, BP, INP, cd)
    attp = _pad2(att, BP, ATP, cd)
    eps_xp = _pad2(eps_x.reshape(B, 1), BP, 1, f32)
    eps_ap = _pad2(eps_att.reshape(B, 1), BP, 1, f32)

    def row_spec(width):
        return pl.BlockSpec((TM, width), lambda i: (i, 0))

    vmem = pl.BlockSpec(memory_space=pltpu.MemorySpace.VMEM)  # resident, no pipelining

    in_specs = [
        row_spec(INP), row_spec(ATP), row_spec(1), row_spec(1),
        vmem, vmem, vmem, vmem,       # w1, b1, wh_x, bh_x
        vmem, vmem, vmem, vmem,       # w2, b2, wh_a, bh_a
    ]
    out_specs = (row_spec(ZP), row_spec(ZP), row_spec(2 * ZP), row_spec(2 * ZP))
    out_shapes = (jax.ShapeDtypeStruct((BP, ZP), f32),
                  jax.ShapeDtypeStruct((BP, ZP), f32),
                  jax.ShapeDtypeStruct((BP, 2 * ZP), f32),
                  jax.ShapeDtypeStruct((BP, 2 * ZP), f32))

    vmem_limit = _vmem_limit_bytes(TM, INP, ATP, HXP, HAP, ZP,
                                   jnp.dtype(cd).itemsize)

    zx, zatt, headx, heada = pl.pallas_call(
        encoder_cada_kernel,
        out_shape=out_shapes,
        grid=grid,
        in_specs=in_specs,
        out_specs=out_specs,
        compiler_params=pltpu.CompilerParams(
            dimension_semantics=("parallel",),   # shards batch tiles across v7x cores
            vmem_limit_bytes=vmem_limit,
        ),
    )(xp, attp, eps_xp, eps_ap,
      prepared["w1"], prepared["b1"], prepared["wh_x"], prepared["bh_x"],
      prepared["w2"], prepared["b2"], prepared["wh_a"], prepared["bh_a"])

    # Crop padding rows/cols and split the fused heads (cheap XLA slices).
    z_x = zx[:B, :z]
    z_att = zatt[:B, :z]
    mu_x = headx[:B, :z]
    logvar_x = headx[:B, ZP:ZP + z]
    mu_att = heada[:B, :z]
    logvar_att = heada[:B, ZP:ZP + z]
    return z_x, z_att, mu_x, logvar_x, mu_att, logvar_att


# ------------------ deterministic parameter construction ------------------
def xavier_uniform(key, fan_in, fan_out, gain=0.5):
    # nn.init.xavier_uniform_(weight, gain=0.5); weight stored (in, out).
    bound = gain * np.sqrt(6.0 / (fan_in + fan_out))
    return jax.random.uniform(
        key, (fan_in, fan_out), dtype=jnp.float32, minval=-bound, maxval=bound)


def make_params(key, input_dim, atts_dim, hidden_x, hidden_att, z):
    ks = jax.random.split(key, 6)
    return {
        "w1": xavier_uniform(ks[0], input_dim, hidden_x),
        "b1": jnp.zeros((1, hidden_x), jnp.float32),
        "wmu_x": xavier_uniform(ks[1], hidden_x, z),
        "bmu_x": jnp.zeros((1, z), jnp.float32),
        "wlv_x": xavier_uniform(ks[2], hidden_x, z),
        "blv_x": jnp.zeros((1, z), jnp.float32),
        "w2": xavier_uniform(ks[3], atts_dim, hidden_att),
        "b2": jnp.zeros((1, hidden_att), jnp.float32),
        "wmu_a": xavier_uniform(ks[4], hidden_att, z),
        "bmu_a": jnp.zeros((1, z), jnp.float32),
        "wlv_a": xavier_uniform(ks[5], hidden_att, z),
        "blv_a": jnp.zeros((1, z), jnp.float32),
    }


# --------------------------- pure-JAX reference ---------------------------
def reference_forward(x, att, eps_x, eps_att, p, compute_dtype=jnp.bfloat16):
    # Mirrors the kernel's bf16-input / f32-accumulate quantization so the
    # numeric comparison is apples-to-apples with the kernel.
    f32 = jnp.float32
    q = lambda a: a.astype(compute_dtype).astype(f32)
    dot = lambda a, b: jnp.dot(a, b, precision=jax.lax.Precision.HIGHEST)

    h_x = jnp.maximum(dot(q(x), q(p["w1"])) + p["b1"], 0.0)
    h_x = q(h_x)
    mu_x = dot(h_x, q(p["wmu_x"])) + p["bmu_x"]
    lv_x = dot(h_x, q(p["wlv_x"])) + p["blv_x"]
    z_x = mu_x + jnp.exp(lv_x) * eps_x            # eps (B,1) broadcasts across z

    h_a = jnp.maximum(dot(q(att), q(p["w2"])) + p["b2"], 0.0)
    h_a = q(h_a)
    mu_a = dot(h_a, q(p["wmu_a"])) + p["bmu_a"]
    lv_a = dot(h_a, q(p["wlv_a"])) + p["blv_a"]
    z_a = mu_a + jnp.exp(lv_a) * eps_att
    return z_x, z_a, mu_x, lv_x, mu_a, lv_a


if __name__ == "__main__":
    # Small shapes consistent with the module (full-size defaults are
    # input_dim=2048, atts_dim=312, hidden 1560/1450, z=64).  Chosen so that
    # the padding path (non-128-multiples) and a multi-step, megacore-friendly
    # batch grid (grid=(2,) at B=16) are both exercised.
    B, INPUT_DIM, ATTS_DIM, HID_X, HID_A, Z = 16, 256, 120, 192, 176, 64

    key = jax.random.PRNGKey(0)
    k_param, k_x, k_att, k_ex, k_ea = jax.random.split(key, 5)

    params = make_params(k_param, INPUT_DIM, ATTS_DIM, HID_X, HID_A, Z)
    prepared = prepare_params(params)           # one-time pad/cast/fuse (hoisted)

    x = jax.random.normal(k_x, (B, INPUT_DIM), jnp.float32)
    att = jax.random.normal(k_att, (B, ATTS_DIM), jnp.float32)
    # Reparameterization noise: (B, 1), expanded across z inside the kernel.
    # TODO(synk): the torch module draws eps internally with FloatTensor.normal_;
    # it is passed explicitly here for determinism.
    eps_x = jax.random.normal(k_ex, (B, 1), jnp.float32)
    eps_att = jax.random.normal(k_ea, (B, 1), jnp.float32)

    outs = encoder_cada_forward(x, att, eps_x, eps_att, prepared)
    outs = jax.block_until_ready(outs)

    refs = reference_forward(x, att, eps_x, eps_att, params)
    for o, r in zip(outs, refs):
        np.testing.assert_allclose(np.asarray(o), np.asarray(r),
                                   rtol=1e-2, atol=1e-2)

    print("KERNEL_OK")
</pallas_src>

<mosaic_0001>
module attributes {stable_mosaic.version = 11 : i64} {
  func.func @encoder_cada_kernel(%arg0: i32, %arg1: memref<8x256xbf16, #tpu.memory_space<vmem>>, %arg2: memref<8x128xbf16, #tpu.memory_space<vmem>>, %arg3: memref<8x1xf32, #tpu.memory_space<vmem>>, %arg4: memref<8x1xf32, #tpu.memory_space<vmem>>, %arg5: memref<256x256xbf16, #tpu.memory_space<vmem>>, %arg6: memref<1x256xf32, #tpu.memory_space<vmem>>, %arg7: memref<256x256xbf16, #tpu.memory_space<vmem>>, %arg8: memref<1x256xf32, #tpu.memory_space<vmem>>, %arg9: memref<128x256xbf16, #tpu.memory_space<vmem>>, %arg10: memref<1x256xf32, #tpu.memory_space<vmem>>, %arg11: memref<256x256xbf16, #tpu.memory_space<vmem>>, %arg12: memref<1x256xf32, #tpu.memory_space<vmem>>, %arg13: memref<8x128xf32, #tpu.memory_space<vmem>>, %arg14: memref<8x128xf32, #tpu.memory_space<vmem>>, %arg15: memref<8x256xf32, #tpu.memory_space<vmem>>, %arg16: memref<8x256xf32, #tpu.memory_space<vmem>>) attributes {dimension_semantics = [#tpu.dimension_semantics<parallel>], iteration_bounds = array<i64: 2>, scalar_prefetch = 0 : i64, scratch_operands = 0 : i64, tpu.core_type = #tpu.core_type<tc>, window_params = [{transform_indices = @transform_0, window_bounds = array<i64: 8, 256>}, {transform_indices = @transform_1, window_bounds = array<i64: 8, 128>}, {transform_indices = @transform_2, window_bounds = array<i64: 8, 1>}, {transform_indices = @transform_3, window_bounds = array<i64: 8, 1>}, {pipeline_mode = #tpu.pipeline_mode<synchronous>, transform_indices = @transform_4, window_bounds = array<i64: 256, 256>}, {pipeline_mode = #tpu.pipeline_mode<synchronous>, transform_indices = @transform_5, window_bounds = array<i64: 1, 256>}, {pipeline_mode = #tpu.pipeline_mode<synchronous>, transform_indices = @transform_6, window_bounds = array<i64: 256, 256>}, {pipeline_mode = #tpu.pipeline_mode<synchronous>, transform_indices = @transform_7, window_bounds = array<i64: 1, 256>}, {pipeline_mode = #tpu.pipeline_mode<synchronous>, transform_indices = @transform_8, window_bounds = array<i64: 128, 256>}, {pipeline_mode = #tpu.pipeline_mode<synchronous>, transform_indices = @transform_9, window_bounds = array<i64: 1, 256>}, {pipeline_mode = #tpu.pipeline_mode<synchronous>, transform_indices = @transform_10, window_bounds = array<i64: 256, 256>}, {pipeline_mode = #tpu.pipeline_mode<synchronous>, transform_indices = @transform_11, window_bounds = array<i64: 1, 256>}, {transform_indices = @transform_12, window_bounds = array<i64: 8, 128>}, {transform_indices = @transform_13, window_bounds = array<i64: 8, 128>}, {transform_indices = @transform_14, window_bounds = array<i64: 8, 256>}, {transform_indices = @transform_15, window_bounds = array<i64: 8, 256>}]} {
    %c0 = arith.constant 0 : index
    %c0_0 = arith.constant 0 : index
    %0 = vector.load %arg1[%c0, %c0_0] : memref<8x256xbf16, #tpu.memory_space<vmem>>, vector<8x256xbf16>
    %c0_1 = arith.constant 0 : index
    %c0_2 = arith.constant 0 : index
    %1 = vector.load %arg5[%c0_1, %c0_2] : memref<256x256xbf16, #tpu.memory_space<vmem>>, vector<256x256xbf16>
    %cst = arith.constant dense<0.000000e+00> : vector<8x256xf32>
    %2 = tpu.matmul %0, %1, %cst {dimension_numbers = #tpu.dot_dimension_numbers<[1], [0], [0], [1], [0, 0, 1, 1], [], []>} : vector<8x256xbf16>, vector<256x256xbf16>, vector<8x256xf32> -> vector<8x256xf32>
    %c0_3 = arith.constant 0 : index
    %c0_4 = arith.constant 0 : index
    %3 = vector.load %arg6[%c0_3, %c0_4] : memref<1x256xf32, #tpu.memory_space<vmem>>, vector<1x256xf32>
    %4 = vector.broadcast %3 : vector<1x256xf32> to vector<8x256xf32>
    %5 = arith.addf %2, %4 : vector<8x256xf32>
    %cst_5 = arith.constant 0.000000e+00 : f32
    %6 = vector.broadcast %cst_5 : f32 to vector<8x256xf32>
    %7 = arith.maximumf %5, %6 : vector<8x256xf32>
    %8 = arith.truncf %7 : vector<8x256xf32> to vector<8x256xbf16>
    %c0_6 = arith.constant 0 : index
    %c0_7 = arith.constant 0 : index
    %9 = vector.load %arg7[%c0_6, %c0_7] : memref<256x256xbf16, #tpu.memory_space<vmem>>, vector<256x256xbf16>
    %cst_8 = arith.constant dense<0.000000e+00> : vector<8x256xf32>
    %10 = tpu.matmul %8, %9, %cst_8 {dimension_numbers = #tpu.dot_dimension_numbers<[1], [0], [0], [1], [0, 0, 1, 1], [], []>} : vector<8x256xbf16>, vector<256x256xbf16>, vector<8x256xf32> -> vector<8x256xf32>
    %c0_9 = arith.constant 0 : index
    %c0_10 = arith.constant 0 : index
    %11 = vector.load %arg8[%c0_9, %c0_10] : memref<1x256xf32, #tpu.memory_space<vmem>>, vector<1x256xf32>
    %12 = vector.broadcast %11 : vector<1x256xf32> to vector<8x256xf32>
    %13 = arith.addf %10, %12 : vector<8x256xf32>
    %c0_11 = arith.constant 0 : index
    %c0_12 = arith.constant 0 : index
    %14 = vector.load %arg15[%c0_11, %c0_12] : memref<8x256xf32, #tpu.memory_space<vmem>>, vector<8x256xf32>
    tpu.vector_store %arg15[%c0_11, %c0_12], %13 {strides = array<i32>} : memref<8x256xf32, #tpu.memory_space<vmem>>, vector<8x256xf32>,
    %c0_13 = arith.constant 0 : index
    %c0_14 = arith.constant 0 : index
    %15 = vector.load %arg3[%c0_13, %c0_14] : memref<8x1xf32, #tpu.memory_space<vmem>>, vector<8x1xf32>
    %16 = vector.extract_strided_slice %13 {offsets = [0, 0], sizes = [8, 128], strides = [1, 1]} : vector<8x256xf32> to vector<8x128xf32>
    %17 = vector.extract_strided_slice %13 {offsets = [0, 128], sizes = [8, 128], strides = [1, 1]} : vector<8x256xf32> to vector<8x128xf32>
    %18 = math.exp %17 : vector<8x128xf32>
    %19 = vector.broadcast %15 : vector<8x1xf32> to vector<8x128xf32>
    %20 = arith.mulf %18, %19 : vector<8x128xf32>
    %21 = arith.addf %16, %20 : vector<8x128xf32>
    %c0_15 = arith.constant 0 : index
    %c0_16 = arith.constant 0 : index
    %22 = vector.load %arg13[%c0_15, %c0_16] : memref<8x128xf32, #tpu.memory_space<vmem>>, vector<8x128xf32>
    tpu.vector_store %arg13[%c0_15, %c0_16], %21 {strides = array<i32>} : memref<8x128xf32, #tpu.memory_space<vmem>>, vector<8x128xf32>,
    %c0_17 = arith.constant 0 : index
    %c0_18 = arith.constant 0 : index
    %23 = vector.load %arg2[%c0_17, %c0_18] : memref<8x128xbf16, #tpu.memory_space<vmem>>, vector<8x128xbf16>
    %c0_19 = arith.constant 0 : index
    %c0_20 = arith.constant 0 : index
    %24 = vector.load %arg9[%c0_19, %c0_20] : memref<128x256xbf16, #tpu.memory_space<vmem>>, vector<128x256xbf16>
    %cst_21 = arith.constant dense<0.000000e+00> : vector<8x256xf32>
    %25 = tpu.matmul %23, %24, %cst_21 {dimension_numbers = #tpu.dot_dimension_numbers<[1], [0], [0], [1], [0, 0, 1, 1], [], []>} : vector<8x128xbf16>, vector<128x256xbf16>, vector<8x256xf32> -> vector<8x256xf32>
    %c0_22 = arith.constant 0 : index
    %c0_23 = arith.constant 0 : index
    %26 = vector.load %arg10[%c0_22, %c0_23] : memref<1x256xf32, #tpu.memory_space<vmem>>, vector<1x256xf32>
    %27 = vector.broadcast %26 : vector<1x256xf32> to vector<8x256xf32>
    %28 = arith.addf %25, %27 : vector<8x256xf32>
    %cst_24 = arith.constant 0.000000e+00 : f32
    %29 = vector.broadcast %cst_24 : f32 to vector<8x256xf32>
    %30 = arith.maximumf %28, %29 : vector<8x256xf32>
    %31 = arith.truncf %30 : vector<8x256xf32> to vector<8x256xbf16>
    %c0_25 = arith.constant 0 : index
    %c0_26 = arith.constant 0 : index
    %32 = vector.load %arg11[%c0_25, %c0_26] : memref<256x256xbf16, #tpu.memory_space<vmem>>, vector<256x256xbf16>
    %cst_27 = arith.constant dense<0.000000e+00> : vector<8x256xf32>
    %33 = tpu.matmul %31, %32, %cst_27 {dimension_numbers = #tpu.dot_dimension_numbers<[1], [0], [0], [1], [0, 0, 1, 1], [], []>} : vector<8x256xbf16>, vector<256x256xbf16>, vector<8x256xf32> -> vector<8x256xf32>
    %c0_28 = arith.constant 0 : index
    %c0_29 = arith.constant 0 : index
    %34 = vector.load %arg12[%c0_28, %c0_29] : memref<1x256xf32, #tpu.memory_space<vmem>>, vector<1x256xf32>
    %35 = vector.broadcast %34 : vector<1x256xf32> to vector<8x256xf32>
    %36 = arith.addf %33, %35 : vector<8x256xf32>
    %c0_30 = arith.constant 0 : index
    %c0_31 = arith.constant 0 : index
    %37 = vector.load %arg16[%c0_30, %c0_31] : memref<8x256xf32, #tpu.memory_space<vmem>>, vector<8x256xf32>
    tpu.vector_store %arg16[%c0_30, %c0_31], %36 {strides = array<i32>} : memref<8x256xf32, #tpu.memory_space<vmem>>, vector<8x256xf32>,
    %c0_32 = arith.constant 0 : index
    %c0_33 = arith.constant 0 : index
    %38 = vector.load %arg4[%c0_32, %c0_33] : memref<8x1xf32, #tpu.memory_space<vmem>>, vector<8x1xf32>
    %39 = vector.extract_strided_slice %36 {offsets = [0, 0], sizes = [8, 128], strides = [1, 1]} : vector<8x256xf32> to vector<8x128xf32>
    %40 = vector.extract_strided_slice %36 {offsets = [0, 128], sizes = [8, 128], strides = [1, 1]} : vector<8x256xf32> to vector<8x128xf32>
    %41 = math.exp %40 : vector<8x128xf32>
    %42 = vector.broadcast %38 : vector<8x1xf32> to vector<8x128xf32>
    %43 = arith.mulf %41, %42 : vector<8x128xf32>
    %44 = arith.addf %39, %43 : vector<8x128xf32>
    %c0_34 = arith.constant 0 : index
    %c0_35 = arith.constant 0 : index
    %45 = vector.load %arg14[%c0_34, %c0_35] : memref<8x128xf32, #tpu.memory_space<vmem>>, vector<8x128xf32>
    tpu.vector_store %arg14[%c0_34, %c0_35], %44 {strides = array<i32>} : memref<8x128xf32, #tpu.memory_space<vmem>>, vector<8x128xf32>,
    return
  }
  func.func @transform_0(%arg0: i32) -> (i32, i32) {
    %c0_i32 = arith.constant 0 : i32
    %c0_i32_0 = arith.constant 0 : i32
    return %arg0, %c0_i32 : i32, i32
  }
  func.func @transform_1(%arg0: i32) -> (i32, i32) {
    %c0_i32 = arith.constant 0 : i32
    %c0_i32_0 = arith.constant 0 : i32
    return %arg0, %c0_i32 : i32, i32
  }
  func.func @transform_2(%arg0: i32) -> (i32, i32) {
    %c0_i32 = arith.constant 0 : i32
    %c0_i32_0 = arith.constant 0 : i32
    return %arg0, %c0_i32 : i32, i32
  }
  func.func @transform_3(%arg0: i32) -> (i32, i32) {
    %c0_i32 = arith.constant 0 : i32
    %c0_i32_0 = arith.constant 0 : i32
    return %arg0, %c0_i32 : i32, i32
  }
  func.func @transform_4(%arg0: i32) -> (i32, i32) {
    %c0_i32 = arith.constant 0 : i32
    %c0_i32_0 = arith.constant 0 : i32
    %c0_i32_1 = arith.constant 0 : i32
    return %c0_i32, %c0_i32_0 : i32, i32
  }
  func.func @transform_5(%arg0: i32) -> (i32, i32) {
    %c0_i32 = arith.constant 0 : i32
    %c0_i32_0 = arith.constant 0 : i32
    %c0_i32_1 = arith.constant 0 : i32
    return %c0_i32, %c0_i32_0 : i32, i32
  }
  func.func @transform_6(%arg0: i32) -> (i32, i32) {
    %c0_i32 = arith.constant 0 : i32
    %c0_i32_0 = arith.constant 0 : i32
    %c0_i32_1 = arith.constant 0 : i32
    return %c0_i32, %c0_i32_0 : i32, i32
  }
  func.func @transform_7(%arg0: i32) -> (i32, i32) {
    %c0_i32 = arith.constant 0 : i32
    %c0_i32_0 = arith.constant 0 : i32
    %c0_i32_1 = arith.constant 0 : i32
    return %c0_i32, %c0_i32_0 : i32, i32
  }
  func.func @transform_8(%arg0: i32) -> (i32, i32) {
    %c0_i32 = arith.constant 0 : i32
    %c0_i32_0 = arith.constant 0 : i32
    %c0_i32_1 = arith.constant 0 : i32
    return %c0_i32, %c0_i32_0 : i32, i32
  }
  func.func @transform_9(%arg0: i32) -> (i32, i32) {
    %c0_i32 = arith.constant 0 : i32
    %c0_i32_0 = arith.constant 0 : i32
    %c0_i32_1 = arith.constant 0 : i32
    return %c0_i32, %c0_i32_0 : i32, i32
  }
  func.func @transform_10(%arg0: i32) -> (i32, i32) {
    %c0_i32 = arith.constant 0 : i32
    %c0_i32_0 = arith.constant 0 : i32
    %c0_i32_1 = arith.constant 0 : i32
    return %c0_i32, %c0_i32_0 : i32, i32
  }
  func.func @transform_11(%arg0: i32) -> (i32, i32) {
    %c0_i32 = arith.constant 0 : i32
    %c0_i32_0 = arith.constant 0 : i32
    %c0_i32_1 = arith.constant 0 : i32
    return %c0_i32, %c0_i32_0 : i32, i32
  }
  func.func @transform_12(%arg0: i32) -> (i32, i32) {
    %c0_i32 = arith.constant 0 : i32
    %c0_i32_0 = arith.constant 0 : i32
    return %arg0, %c0_i32 : i32, i32
  }
  func.func @transform_13(%arg0: i32) -> (i32, i32) {
    %c0_i32 = arith.constant 0 : i32
    %c0_i32_0 = arith.constant 0 : i32
    return %arg0, %c0_i32 : i32, i32
  }
  func.func @transform_14(%arg0: i32) -> (i32, i32) {
    %c0_i32 = arith.constant 0 : i32
    %c0_i32_0 = arith.constant 0 : i32
    return %arg0, %c0_i32 : i32, i32
  }
  func.func @transform_15(%arg0: i32) -> (i32, i32) {
    %c0_i32 = arith.constant 0 : i32
    %c0_i32_0 = arith.constant 0 : i32
    return %arg0, %c0_i32 : i32, i32
  }
}

</mosaic_0001>

<bundles_post_ra>
// kernel: tpu_custom_call.1
= control target key start
LH: loop header
LB: loop body
LE: loop exit
PB: predicated region body
PF: predicated region fallthrough
CT: control target
= control target key end

     0   :  { %s3185_s0 = inlined_call_operand.vmem [shape: bf16[16,256], index: 0, kind: input, shape index: {}]   ;;  %s3186_s1 = inlined_call_operand.vmem [shape: bf16[16,128], index: 1, kind: input, shape index: {}]   ;;  %s3187_s2 = inlined_call_operand.vmem [shape: f32[16,1], index: 2, kind: input, shape index: {}]   ;;  %s3188_s3 = inlined_call_operand.vmem [shape: f32[16,1], index: 3, kind: input, shape index: {}]   ;;  %s3189_s4 = inlined_call_operand.hbm [shape: bf16[256,256], index: 4, kind: input, shape index: {}]   ;;  %s3190_s5 = inlined_call_operand.vmem [shape: f32[1,256], index: 5, kind: input, shape index: {}]   ;;  %s3191_s6 = inlined_call_operand.hbm [shape: bf16[256,256], index: 6, kind: input, shape index: {}]   ;;  %s3192_s7 = inlined_call_operand.vmem [shape: f32[1,256], index: 7, kind: input, shape index: {}]   ;;  %s3193_s8 = inlined_call_operand.hbm [shape: bf16[128,256], index: 8, kind: input, shape index: {}]   ;;  %s3194_s9 = inlined_call_operand.vmem [shape: f32[1,256], index: 9, kind: input, shape index: {}]   ;;  %s3195_s10 = inlined_call_operand.hbm [shape: bf16[256,256], index: 10, kind: input, shape index: {}]   ;;  %s3196_s11 = inlined_call_operand.vmem [shape: f32[1,256], index: 11, kind: input, shape index: {}]   ;;  %s3197_s12 = inlined_call_operand.hbm [shape: f32[16,128], index: 12, kind: output, shape index: {0}]   ;;  %s3198_s13 = inlined_call_operand.hbm [shape: f32[16,128], index: 13, kind: output, shape index: {1}]   ;;  %s3199_s14 = inlined_call_operand.hbm [shape: f32[16,256], index: 14, kind: output, shape index: {2}]   ;;  %s3200_s15 = inlined_call_operand.hbm [shape: f32[16,256], index: 15, kind: output, shape index: {3}]  }
   0x1   :  { %3214 = sst [smem:[#allocation28_spill]] %s3185_s0 }
   0x2   :  { %3215 = sst [smem:[#allocation29_spill]] %s3186_s1 }
   0x3   :  { %3216 = sst [smem:[#allocation30_spill]] %s3187_s2 }
   0x4   :  { %3217 = sst [smem:[#allocation31_spill]] %s3188_s3 }
   0x5   :  { %3218 = sst [smem:[#allocation32_spill]] %s3189_s4 }
   0x6   :  { %3219 = sst [smem:[#allocation33_spill]] %s3190_s5 }
   0x7   :  { %3220 = sst [smem:[#allocation34_spill]] %s3191_s6 }
   0x8   :  { %3221 = sst [smem:[#allocation35_spill]] %s3192_s7 }
   0x9   :  { %3222 = sst [smem:[#allocation36_spill]] %s3193_s8 }
   0xa   :  { %3223 = sst [smem:[#allocation37_spill]] %s3198_s13 }
   0xb   :  { %3224 = sst [smem:[#allocation38_spill]] %s3199_s14 }
   0xc   :  { %3225 = sst [smem:[#allocation39_spill]] %s3200_s15 }
   0xd   :  { %21 = vsyncpa [#allocation3], 0 }
   0xe   :  { %22 = vsyncpa [#allocation6], 0 }
   0xf   :  { %23 = vsyncpa [#allocation9], 0 }
  0x10   :  { %24 = vsyncpa [#allocation4], 0 }
  0x11   :  { %26 = vsyncpa [#allocation4 + $0x1], 0 }
  0x12   :  { %27 = vsyncpa [#allocation12], 0 }
  0x13   :  { %29 = vsyncpa [#allocation12 + $0x1], 0 }
  0x14   :  { %30 = vsyncpa [#allocation15], 0 }
  0x15   :  { %32 = vsyncpa [#allocation15 + $0x1], 0  ;;  %s2941_s18 = smov 0   ;;  %s2943_s19 = smov 0  }
  0x16   :  { %s2945_s20 = smov 0   ;;  %s2947_s21 = smov 0  }
  0x17 LB: > { %3226 = sst [smem:[#allocation22_spill]] %s2840_s18  ;;  %s2962_s22 = sadd.s32 4294967295, %s2852_s21   ;;  %s2852_s21 = sphi %s2947_s21, %s3255_s21   ;;  %s2848_s20 = sphi %s2945_s20, %s3257_s20   ;;  %s2844_s19 = sphi %s2943_s19, %s3259_s19   ;;  %s2840_s18 = sphi %s2941_s18, %s3258_s18  }
  0x18   : > { %3227 = sst [smem:[#allocation23_spill]] %s2848_s20  ;;  %s3201_s23 = sadd.s32 4294967294, %s2852_s21  }
  0x19   : > { %3228 = sst [smem:[#allocation24_spill]] %s2852_s21  ;;  %s2966_s24 = sadd.s32 1, %s2852_s21  }
  0x1a   : > { %3229 = sst [smem:[#allocation25_spill]] %s2966_s24  ;;  %s317_s25 = sadd.s32 1, %s2848_s20 }
  0x1b   : > { %s314_s26 = ssub.s32 %s2852_s21, %s2966_s24  ;;  %p327_p0 = scmp.ne.s32.totalorder %s2848_s20, %s2844_s19 }
  0x1c   : > { %p315_p1 = scmp.eq.s32.totalorder %s314_s26, 0  ;;  %p328_p2 = scmp.eq.s32.totalorder %s2962_s22, 1 }
  0x1d   : > { %p333_p3 = scmp.ne.s32.totalorder %s2844_s19, %s2840_s18  ;;  %p334_p4 = scmp.eq.s32.totalorder %s3201_s23, 1 }
  0x1e   : > { %s2979_s27 = scalar_select %p315_p1, %s2848_s20, %s317_s25  }
  0x1f   : > { %p2981_p5 = por %p328_p2, %p327_p0  ;;  %p2985_p6 = por %p334_p4, %p333_p3 }
  0x20   : > { %3230 = sst [smem:[#allocation26_spill]] %s2979_s27  ;;  %p1868_p7 = scmp.ge.s32.totalorder %s2852_s21, 1 }
  0x21   : > { %s3232_s29 = scalar_select %p2985_p6, 1, 0 }
  0x22   : > { %p419_p8 = scmp.lt.s32.totalorder %s2852_s21, 3  ;;  %p2513_p9 = scmp.eq.s32.totalorder %s2962_s22, 0 }
  0x23   : > { %3233 = sst [smem:[#allocation27_spill]] %s3232_s29  ;;  %s2854_s24 = smov [#allocation5]  }
  0x24   : > { %p2992_p10 = pnand %p1868_p7, %p419_p8  ;;  %s3235_s6 = sld [smem:[#allocation34_spill]] }
  0x25   : > { %s3236_s4 = sld [smem:[#allocation32_spill]]  ;;  %s449_s29 = sshll.u32 %s2854_s24, 4  ;;  %s450_s29 = int_to_ptr.vmem [resolvable:$true] %s449_s29 }
  0x26   : > { %p2487_p11 = pneg %p2992_p10  ;;  %s2855_s16 = smov 128  }
  0x27   : > { %s2856_s17 = smov 8   ;;  %s3238_s8 = sld [smem:[#allocation36_spill]] }
  0x28   : > { %p3006_p12 = pnand %p2513_p9, %p2487_p11  ;;  %s481_s14 = sshll.u32 %s3195_s10, 4  ;;  %s482_s14 = int_to_ptr.hbm [resolvable:$true] %s481_s14 }
  0x29   : > { %s2858_s13 = smov [#allocation7]  }
  0x2a   : > { %s447_s25 = sshll.u32 %s3235_s6, 4  ;;  %s2857_s6 = smov [#allocation2]   ;;  %s448_s25 = int_to_ptr.hbm [resolvable:$true] %s447_s25 }
  0x2b   : > { %s430_s27 = sshll.u32 %s3236_s4, 4  ;;  %s432_s23 = sshll.u32 %s2857_s6, 4  ;;  %s431_s27 = int_to_ptr.hbm [resolvable:$true] %s430_s27  ;;  %s433_s23 = int_to_ptr.vmem [resolvable:$true] %s432_s23 }
  0x2c   : > { %2493 = dma.hbm_to_vmem [thread:$0]  (!%p3006_p12), %s448_s25, 4096, %s450_s29, [#allocation6], %s2855_s16, %s2855_s16, %s2856_s17  }
  0x2d   : > { %s464_s18 = sshll.u32 %s3238_s8, 4  ;;  %s466_s15 = sshll.u32 %s2858_s13, 4  ;;  %s465_s18 = int_to_ptr.hbm [resolvable:$true] %s464_s18  ;;  %s467_s15 = int_to_ptr.vmem [resolvable:$true] %s466_s15 }
  0x2e   : > { %2490 = dma.hbm_to_vmem [thread:$0]  (!%p3006_p12), %s431_s27, 4096, %s433_s23, [#allocation3], %s2855_s16, %s2855_s16, %s2856_s17  }
  0x2f   : > { %2496 = dma.hbm_to_vmem [thread:$0]  (!%p3006_p12), %s465_s18, 2048, %s467_s15, [#allocation6], %s2855_s16, %s2855_s16, %s2856_s17  }
  0x30   : > { %s2859_s29 = smov [#allocation8]   ;;  %531 = sbr.rel (%p2992_p10) target bundleno = 547 (0x223), region = 68 }
  0x31   : > { %s483_s6 = sshll.u32 %s2859_s29, 4  ;;  %s484_s6 = int_to_ptr.vmem [resolvable:$true] %s483_s6 }
  0x32   : > { %2499 = dma.hbm_to_vmem [thread:$0]  (!%p3006_p12), %s482_s14, 4096, %s484_s6, [#allocation9], %s2855_s16, %s2855_s16, %s2856_s17  }
  0x35   : > { %2815 = dma.done.wait (%p2513_p9), [#allocation3], 4096  }
  0x36   : > { %2817 = vsyncadd (%p2513_p9), [#allocation3], 4294963200 }
  0x37   : > { %2819 = dma.done.wait (%p2513_p9), [#allocation6], 6144  }
  0x38   : > { %2821 = vsyncadd (%p2513_p9), [#allocation6], 4294961152 }
  0x39   : > { %2823 = dma.done.wait (%p2513_p9), [#allocation9], 4096  }
  0x3a   : > { %2825 = vsyncadd (%p2513_p9), [#allocation9], 4294963200  ;;  %p622_p13 = scmp.lt.s32.totalorder %s2962_s22, 1  ;;  %v1946_v0 = vld [vmem:[#allocation2 + $0x70] sm:$0xf]  ;;  %s3239_s0 = sld [smem:[#allocation28_spill]] }
  0x3b   : > { %v2364_v1 = vld [vmem:[#allocation2 + $0x74] sm:$0xf0]  ;;  %v2010_v2 = vld [vmem:[#allocation2 + $0xf0] sm:$0xf]  ;;  %v2363_v5 = vld [vmem:[#allocation2 + $0x74] sm:$0xf] }
  0x3c   : > { %v1947_v3 = vor.u32 %v2364_v1, %v1946_v0  ;;  %v2380_v4 = vld [vmem:[#allocation2 + $0xf4] sm:$0xf0]  ;;  %v1948_v6 = vld [vmem:[#allocation2 + $0x78] sm:$0xf0]  ;;  %v2379_v9 = vld [vmem:[#allocation2 + $0xf4] sm:$0xf] }
  0x3d   : > { %v2011_v7 = vor.u32 %v2380_v4, %v2010_v2  ;;  %v1951_v8 = vor.u32 %v2363_v5, %v1948_v6  ;;  %v2012_v10 = vld [vmem:[#allocation2 + $0xf8] sm:$0xf0]  ;;  %v1938_v11 = vld [vmem:[#allocation2 + $0x60] sm:$0xf]  ;;  %v2362_v13 = vld [vmem:[#allocation2 + $0x64] sm:$0xf0] }
  0x3e   : > { %845 = vmatpush.bf16.msra.mxu0 %v1947_v3  ;;  %v2015_v12 = vor.u32 %v2379_v9, %v2012_v10  ;;  %v2002_v14 = vld [vmem:[#allocation2 + $0xe0] sm:$0xf]  ;;  %v2378_v15 = vld [vmem:[#allocation2 + $0xe4] sm:$0xf0]  ;;  %v1939_v16 = vor.u32 %v2362_v13, %v1938_v11  ;;  %v2361_v18 = vld [vmem:[#allocation2 + $0x64] sm:$0xf] }
  0x3f   : > { %858 = vmatpush.bf16.msra.mxu1 %v2011_v7  ;;  %871 = vmatpush.bf16.msra.mxu2 %v1951_v8  ;;  %v2003_v17 = vor.u32 %v2378_v15, %v2002_v14  ;;  %v1940_v19 = vld [vmem:[#allocation2 + $0x68] sm:$0xf0]  ;;  %v2377_v20 = vld [vmem:[#allocation2 + $0xe4] sm:$0xf]  ;;  %v1930_v23 = vld [vmem:[#allocation2 + $0x50] sm:$0xf] }
  0x40   : > { %884 = vmatpush.bf16.msra.mxu3 %v2015_v12  ;;  %v1943_v21 = vor.u32 %v2361_v18, %v1940_v19  ;;  %v2004_v22 = vld [vmem:[#allocation2 + $0xe8] sm:$0xf0]  ;;  %v2360_v24 = vld [vmem:[#allocation2 + $0x54] sm:$0xf0]  ;;  %v1994_v26 = vld [vmem:[#allocation2 + $0xd0] sm:$0xf] }
  0x41   : > { %v2007_v25 = vor.u32 %v2377_v20, %v2004_v22  ;;  %v2376_v27 = vld [vmem:[#allocation2 + $0xd4] sm:$0xf0]  ;;  %v2359_v28 = vld [vmem:[#allocation2 + $0x54] sm:$0xf]  ;;  %v1931_v29 = vor.u32 %v2360_v24, %v1930_v23  ;;  %v1932_v30 = vld [vmem:[#allocation2 + $0x58] sm:$0xf0] }
  0x42   : > { %846 = vmatpush.bf16.msra.mxu0 %v1939_v16  ;;  %v2375_v31 = vld [vmem:[#allocation2 + $0xd4] sm:$0xf]  ;;  %v1996_v32 = vld [vmem:[#allocation2 + $0xd8] sm:$0xf0]  ;;  %v1995_v33 = vor.u32 %v2376_v27, %v1994_v26  ;;  %v1935_v34 = vor.u32 %v2359_v28, %v1932_v30  ;;  %v1922_v35 = vld [vmem:[#allocation2 + $0x40] sm:$0xf] }
  0x43   : > { %859 = vmatpush.bf16.msra.mxu1 %v2003_v17  ;;  %872 = vmatpush.bf16.msra.mxu2 %v1943_v21  ;;  %v2358_v36 = vld [vmem:[#allocation2 + $0x44] sm:$0xf0]  ;;  %v1986_v37 = vld [vmem:[#allocation2 + $0xc0] sm:$0xf]  ;;  %v1999_v38 = vor.u32 %v2375_v31, %v1996_v32  ;;  %v2357_v40 = vld [vmem:[#allocation2 + $0x44] sm:$0xf] }
  0x44   : > { %885 = vmatpush.bf16.msra.mxu3 %v2007_v25  ;;  %v2374_v39 = vld [vmem:[#allocation2 + $0xc4] sm:$0xf0]  ;;  %v1924_v41 = vld [vmem:[#allocation2 + $0x48] sm:$0xf0]  ;;  %v2373_v42 = vld [vmem:[#allocation2 + $0xc4] sm:$0xf]  ;;  %v1923_v44 = vor.u32 %v2358_v36, %v1922_v35 }
  0x45   : > { %v1988_v43 = vld [vmem:[#allocation2 + $0xc8] sm:$0xf0]  ;;  %s3042_s4 = scalar_select %p622_p13, %s2962_s22, 1  ;;  %v1987_v45 = vor.u32 %v2374_v39, %v1986_v37  ;;  %v1927_v46 = vor.u32 %v2357_v40, %v1924_v41  ;;  %v1914_v47 = vld [vmem:[#allocation2 + $0x30] sm:$0xf] }
  0x46   : > { %847 = vmatpush.bf16.msra.mxu0 %v1931_v29  ;;  %v2356_v48 = vld [vmem:[#allocation2 + $0x34] sm:$0xf0]  ;;  %v1978_v49 = vld [vmem:[#allocation2 + $0xb0] sm:$0xf]  ;;  %v1991_v50 = vor.u32 %v2373_v42, %v1988_v43  ;;  %v2355_v52 = vld [vmem:[#allocation2 + $0x34] sm:$0xf] }
  0x47   : > { %860 = vmatpush.bf16.msra.mxu1 %v1995_v33  ;;  %873 = vmatpush.bf16.msra.mxu2 %v1935_v34  ;;  %v2372_v51 = vld [vmem:[#allocation2 + $0xb4] sm:$0xf0]  ;;  %v1916_v53 = vld [vmem:[#allocation2 + $0x38] sm:$0xf0]  ;;  %v2371_v54 = vld [vmem:[#allocation2 + $0xb4] sm:$0xf]  ;;  %v1915_v56 = vor.u32 %v2356_v48, %v1914_v47 }
  0x48   : > { %886 = vmatpush.bf16.msra.mxu3 %v1999_v38  ;;  %v1980_v55 = vld [vmem:[#allocation2 + $0xb8] sm:$0xf0]  ;;  %s3045_s13 = sshll.u32 %s3042_s4, 3  ;;  %v1979_v57 = vor.u32 %v2372_v51, %v1978_v49  ;;  %v1919_v58 = vor.u32 %v2355_v52, %v1916_v53  ;;  %v1906_v59 = vld [vmem:[#allocation2 + $0x20] sm:$0xf]  ;;  %s3240_s5 = sld [smem:[#allocation33_spill]] }
  0x49   : > { %v2354_v60 = vld [vmem:[#allocation2 + $0x24] sm:$0xf0]  ;;  %v1970_v61 = vld [vmem:[#allocation2 + $0xa0] sm:$0xf]  ;;  %v1983_v62 = vor.u32 %v2371_v54, %v1980_v55  ;;  %v2353_v0 = vld [vmem:[#allocation2 + $0x24] sm:$0xf]  ;;  %s626_s18 = scalar_lea.vmem %s3239_s0, %s3045_s13 }
  0x4a   : > { %848 = vmatpush.bf16.msra.mxu0 %v1923_v44  ;;  %v2370_v63 = vld [vmem:[#allocation2 + $0xa4] sm:$0xf0]  ;;  %v1908_v1 = vld [vmem:[#allocation2 + $0x28] sm:$0xf0]  ;;  %v2369_v2 = vld [vmem:[#allocation2 + $0xa4] sm:$0xf]  ;;  %v1907_v4 = vor.u32 %v2354_v60, %v1906_v59 }
  0x4b   : > { %861 = vmatpush.bf16.msra.mxu1 %v1987_v45  ;;  %874 = vmatpush.bf16.msra.mxu2 %v1927_v46  ;;  %v1972_v3 = vld [vmem:[#allocation2 + $0xa8] sm:$0xf0]  ;;  %v1971_v5 = vor.u32 %v2370_v63, %v1970_v61  ;;  %v1911_v6 = vor.u32 %v2353_v0, %v1908_v1  ;;  %v1898_v7 = vld [vmem:[#allocation2 + $0x10] sm:$0xf]  ;;  %v2352_v8 = vld [vmem:[#allocation2 + $0x14] sm:$0xf0] }
  0x4c   : > { %887 = vmatpush.bf16.msra.mxu3 %v1991_v50  ;;  %v1962_v9 = vld [vmem:[#allocation2 + $0x90] sm:$0xf]  ;;  %v1975_v10 = vor.u32 %v2369_v2, %v1972_v3  ;;  %v2368_v11 = vld [vmem:[#allocation2 + $0x94] sm:$0xf0]  ;;  %v2351_v12 = vld [vmem:[#allocation2 + $0x14] sm:$0xf]  ;;  %v1899_v16 = vor.u32 %v2352_v8, %v1898_v7 }
  0x4d   : > { %v1900_v13 = vld [vmem:[#allocation2 + $0x18] sm:$0xf0]  ;;  %v2367_v14 = vld [vmem:[#allocation2 + $0x94] sm:$0xf]  ;;  %v1890_v17 = vld [vmem:[#allocation2] sm:$0xf]  ;;  %v1963_v19 = vor.u32 %v2368_v11, %v1962_v9 }
  0x4e   : > { %849 = vmatpush.bf16.msra.mxu0 %v1915_v56  ;;  %v1964_v15 = vld [vmem:[#allocation2 + $0x98] sm:$0xf0]  ;;  %v639_v18 = vld [vmem:[%s626_s18] sm:$0xff]  ;;  %v1903_v20 = vor.u32 %v2351_v12, %v1900_v13  ;;  %v2350_v21 = vld [vmem:[#allocation2 + $0x4] sm:$0xf0]  ;;  %s3241_s3 = sld [smem:[#allocation31_spill]] }
  0x4f   : > { %862 = vmatpush.bf16.msra.mxu1 %v1979_v57  ;;  %875 = vmatpush.bf16.msra.mxu2 %v1919_v58  ;;  %v1954_v22 = vld [vmem:[#allocation2 + $0x80] sm:$0xf]  ;;  %v2366_v23 = vld [vmem:[#allocation2 + $0x84] sm:$0xf0]  ;;  %v1967_v24 = vor.u32 %v2367_v14, %v1964_v15  ;;  %v2349_v25 = vld [vmem:[#allocation2 + $0x4] sm:$0xf]  ;;  %v679_v29 = vunpack.c.l.b16 %v639_v18  ;;  %v1891_v32 = vor.u32 %v2350_v21, %v1890_v17  ;;  %v680_v33 = vunpack.c.h.b16 %v639_v18 }
  0x50   : > { %888 = vmatpush.bf16.msra.mxu3 %v1983_v62  ;;  %v1892_v26 = vld [vmem:[#allocation2 + $0x8] sm:$0xf0]  ;;  %v2365_v27 = vld [vmem:[#allocation2 + $0x84] sm:$0xf]  ;;  %v2074_v30 = vld [vmem:[#allocation5 + $0x70] sm:$0xf]  ;;  %v1955_v36 = vor.u32 %v2366_v23, %v1954_v22 }
  0x51   : > { %v1956_v28 = vld [vmem:[#allocation2 + $0x88] sm:$0xf0]  ;;  %v2396_v31 = vld [vmem:[#allocation5 + $0x74] sm:$0xf0]  ;;  %v2138_v34 = vld [vmem:[#allocation5 + $0xf0] sm:$0xf]  ;;  %v1895_v37 = vor.u32 %v2349_v25, %v1892_v26  ;;  %v681_v43 = vpack.c.b16 %v679_v29, %v679_v29  ;;  %v682_v48 = vpack.c.b16 %v680_v33, %v680_v33 }
  0x52   : > { %850 = vmatpush.bf16.msra.mxu0 %v1907_v4  ;;  %v2412_v35 = vld [vmem:[#allocation5 + $0xf4] sm:$0xf0]  ;;  %v1959_v38 = vor.u32 %v2365_v27, %v1956_v28  ;;  %v2075_v39 = vor.u32 %v2396_v31, %v2074_v30  ;;  %v2066_v40 = vld [vmem:[#allocation5 + $0x60] sm:$0xf]  ;;  %v2395_v41 = vld [vmem:[#allocation5 + $0x74] sm:$0xf] }
  0x53   : > { %863 = vmatpush.bf16.msra.mxu1 %v1971_v5  ;;  %876 = vmatpush.bf16.msra.mxu2 %v1911_v6  ;;  %v2076_v42 = vld [vmem:[#allocation5 + $0x78] sm:$0xf0]  ;;  %v2394_v44 = vld [vmem:[#allocation5 + $0x64] sm:$0xf0]  ;;  %v2139_v45 = vor.u32 %v2412_v35, %v2138_v34  ;;  %v2411_v46 = vld [vmem:[#allocation5 + $0xf4] sm:$0xf] }
  0x54   : > { %889 = vmatpush.bf16.msra.mxu3 %v1975_v10  ;;  %v2140_v47 = vld [vmem:[#allocation5 + $0xf8] sm:$0xf0]  ;;  %v2130_v49 = vld [vmem:[#allocation5 + $0xe0] sm:$0xf]  ;;  %v2410_v50 = vld [vmem:[#allocation5 + $0xe4] sm:$0xf0]  ;;  %v2079_v51 = vor.u32 %v2395_v41, %v2076_v42  ;;  %v2067_v52 = vor.u32 %v2394_v44, %v2066_v40  ;;  %s638_s25 = scalar_lea.vmem %s3241_s3, %s3045_s13 }
  0x55   : > { %v2058_v53 = vld [vmem:[#allocation5 + $0x50] sm:$0xf]  ;;  %v2393_v54 = vld [vmem:[#allocation5 + $0x64] sm:$0xf]  ;;  %v2068_v55 = vld [vmem:[#allocation5 + $0x68] sm:$0xf0]  ;;  %v2143_v56 = vor.u32 %v2411_v46, %v2140_v47  ;;  %v2131_v58 = vor.u32 %v2410_v50, %v2130_v49 }
  0x56   : > { %851 = vmatpush.bf16.msra.mxu0 %v1899_v16  ;;  %v2392_v57 = vld [vmem:[#allocation5 + $0x54] sm:$0xf0]  ;;  %v2409_v59 = vld [vmem:[#allocation5 + $0xe4] sm:$0xf]  ;;  %v2132_v60 = vld [vmem:[#allocation5 + $0xe8] sm:$0xf0]  ;;  %v2071_v63 = vor.u32 %v2393_v54, %v2068_v55 }
  0x57   : > { %864 = vmatpush.bf16.msra.mxu1 %v1963_v19  ;;  %877 = vmatpush.bf16.msra.mxu2 %v1903_v20  ;;  %v2122_v61 = vld [vmem:[#allocation5 + $0xd0] sm:$0xf]  ;;  %v2408_v62 = vld [vmem:[#allocation5 + $0xd4] sm:$0xf0]  ;;  %v2059_v0 = vor.u32 %v2392_v57, %v2058_v53  ;;  %v2050_v1 = vld [vmem:[#allocation5 + $0x40] sm:$0xf]  ;;  %v2135_v4 = vor.u32 %v2409_v59, %v2132_v60 }
  0x58   : > { %890 = vmatpush.bf16.msra.mxu3 %v1967_v24  ;;  %v2391_v2 = vld [vmem:[#allocation5 + $0x54] sm:$0xf]  ;;  %v2060_v3 = vld [vmem:[#allocation5 + $0x58] sm:$0xf0]  ;;  %v2390_v5 = vld [vmem:[#allocation5 + $0x44] sm:$0xf0]  ;;  %v2123_v6 = vor.u32 %v2408_v62, %v2122_v61 }
  0x59   : > { %v2407_v7 = vld [vmem:[#allocation5 + $0xd4] sm:$0xf]  ;;  %v2124_v8 = vld [vmem:[#allocation5 + $0xd8] sm:$0xf0]  ;;  %v2114_v9 = vld [vmem:[#allocation5 + $0xc0] sm:$0xf]  ;;  %v2063_v11 = vor.u32 %v2391_v2, %v2060_v3  ;;  %v2051_v12 = vor.u32 %v2390_v5, %v2050_v1 }
  0x5a   : > { %852 = vmatpush.bf16.msra.mxu0 %v1891_v32  ;;  %v2406_v10 = vld [vmem:[#allocation5 + $0xc4] sm:$0xf0]  ;;  %v2042_v13 = vld [vmem:[#allocation5 + $0x30] sm:$0xf]  ;;  %v2389_v14 = vld [vmem:[#allocation5 + $0x44] sm:$0xf]  ;;  %v2127_v16 = vor.u32 %v2407_v7, %v2124_v8 }
  0x5b   : > { %865 = vmatpush.bf16.msra.mxu1 %v1955_v36  ;;  %878 = vmatpush.bf16.msra.mxu2 %v1895_v37  ;;  %v2052_v15 = vld [vmem:[#allocation5 + $0x48] sm:$0xf0]  ;;  %v2388_v17 = vld [vmem:[#allocation5 + $0x34] sm:$0xf0]  ;;  %v2115_v18 = vor.u32 %v2406_v10, %v2114_v9  ;;  %v2405_v19 = vld [vmem:[#allocation5 + $0xc4] sm:$0xf] }
  0x5c   : > { %891 = vmatpush.bf16.msra.mxu3 %v1959_v38  ;;  %v2116_v20 = vld [vmem:[#allocation5 + $0xc8] sm:$0xf0]  ;;  %v2106_v21 = vld [vmem:[#allocation5 + $0xb0] sm:$0xf]  ;;  %v2404_v22 = vld [vmem:[#allocation5 + $0xb4] sm:$0xf0]  ;;  %v2055_v23 = vor.u32 %v2389_v14, %v2052_v15  ;;  %v2043_v24 = vor.u32 %v2388_v17, %v2042_v13 }
  0x5d   : > { %853 = vmatmul.bf16.vlgmr.msra.gmra.mxu0 %v681_v43  ;;  %v2387_v25 = vld [vmem:[#allocation5 + $0x34] sm:$0xf]  ;;  %v2044_v26 = vld [vmem:[#allocation5 + $0x38] sm:$0xf0]  ;;  %v2119_v27 = vor.u32 %v2405_v19, %v2116_v20  ;;  %v2034_v28 = vld [vmem:[#allocation5 + $0x20] sm:$0xf]  ;;  %v2107_v30 = vor.u32 %v2404_v22, %v2106_v21 }
  0x5e   : > { %1099 = vmatpush.bf16.msrb.mxu0 %v2075_v39  ;;  %866 = vmatmul.bf16.vlgmr.msra.gmra.mxu1 %v682_v48  ;;  %v2386_v29 = vld [vmem:[#allocation5 + $0x24] sm:$0xf0]  ;;  %v2098_v31 = vld [vmem:[#allocation5 + $0xa0] sm:$0xf]  ;;  %v2047_v33 = vor.u32 %v2387_v25, %v2044_v26  ;;  %v2385_v35 = vld [vmem:[#allocation5 + $0x24] sm:$0xf] }
  0x5f   : > { %1112 = vmatpush.bf16.msrb.mxu1 %v2139_v45  ;;  %879 = vmatmul.bf16.vlgmr.msra.gmra.mxu2 %v681_v43  ;;  %v2402_v32 = vld [vmem:[#allocation5 + $0xa4] sm:$0xf0]  ;;  %v2035_v34 = vor.u32 %v2386_v29, %v2034_v28  ;;  %v2036_v36 = vld [vmem:[#allocation5 + $0x28] sm:$0xf0]  ;;  %v2026_v37 = vld [vmem:[#allocation5 + $0x10] sm:$0xf] }
  0x60   : > { %892 = vmatmul.bf16.vlgmr.msra.gmra.mxu3 %v682_v48  ;;  %1125 = vmatpush.bf16.msrb.mxu2 %v2079_v51  ;;  %v2384_v38 = vld [vmem:[#allocation5 + $0x14] sm:$0xf0]  ;;  %v2099_v39 = vor.u32 %v2402_v32, %v2098_v31  ;;  %v2090_v40 = vld [vmem:[#allocation5 + $0x90] sm:$0xf]  ;;  %v2039_v42 = vor.u32 %v2385_v35, %v2036_v36  ;;  %v2018_v44 = vld [vmem:[#allocation5] sm:$0xf] }
  0x61   : > { %1138 = vmatpush.bf16.msrb.mxu3 %v2143_v56  ;;  %v2400_v41 = vld [vmem:[#allocation5 + $0x94] sm:$0xf0]  ;;  %v2027_v43 = vor.u32 %v2384_v38, %v2026_v37  ;;  %v2382_v45 = vld [vmem:[#allocation5 + $0x4] sm:$0xf0]  ;;  %v2202_v46 = vld [vmem:[#allocation7 + $0x70] sm:$0xf] }
  0x62   : > { %1100 = vmatpush.bf16.msrb.mxu0 %v2067_v52  ;;  %v2091_v47 = vor.u32 %v2400_v41, %v2090_v40  ;;  %v2428_v48 = vld [vmem:[#allocation7 + $0x74] sm:$0xf0]  ;;  %v2082_v49 = vld [vmem:[#allocation5 + $0x80] sm:$0xf]  ;;  %v2398_v50 = vld [vmem:[#allocation5 + $0x84] sm:$0xf0]  ;;  %v2019_v51 = vor.u32 %v2382_v45, %v2018_v44 }
  0x63   : > { %1113 = vmatpush.bf16.msrb.mxu1 %v2131_v58  ;;  %v2203_v52 = vor.u32 %v2428_v48, %v2202_v46  ;;  %v2083_v53 = vor.u32 %v2398_v50, %v2082_v49  ;;  %v2194_v54 = vld [vmem:[#allocation7 + $0x60] sm:$0xf]  ;;  %v2426_v55 = vld [vmem:[#allocation7 + $0x64] sm:$0xf0]  ;;  %v2403_v57 = vld [vmem:[#allocation5 + $0xb4] sm:$0xf] }
  0x64   : > { %1126 = vmatpush.bf16.msrb.mxu2 %v2071_v63  ;;  %v2195_v56 = vor.u32 %v2426_v55, %v2194_v54  ;;  %v2108_v58 = vld [vmem:[#allocation5 + $0xb8] sm:$0xf0]  ;;  %v2427_v59 = vld [vmem:[#allocation7 + $0x74] sm:$0xf]  ;;  %v2186_v1 = vld [vmem:[#allocation7 + $0x50] sm:$0xf] }
  0x65   : > { %1139 = vmatpush.bf16.msrb.mxu3 %v2135_v4  ;;  %v2111_v60 = vor.u32 %v2403_v57, %v2108_v58  ;;  %v2204_v61 = vld [vmem:[#allocation7 + $0x78] sm:$0xf0]  ;;  %v2383_v63 = vld [vmem:[#allocation5 + $0x14] sm:$0xf]  ;;  %v2424_v3 = vld [vmem:[#allocation7 + $0x54] sm:$0xf0] }
  0x66   : > { %1101 = vmatpush.bf16.msrb.mxu0 %v2059_v0  ;;  %v2207_v62 = vor.u32 %v2427_v59, %v2204_v61  ;;  %v2028_v0 = vld [vmem:[#allocation5 + $0x18] sm:$0xf0]  ;;  %v2187_v4 = vor.u32 %v2424_v3, %v2186_v1  ;;  %v2401_v5 = vld [vmem:[#allocation5 + $0xa4] sm:$0xf]  ;;  %v2196_v9 = vld [vmem:[#allocation7 + $0x68] sm:$0xf0] }
  0x67   : > { %1114 = vmatpush.bf16.msrb.mxu1 %v2123_v6  ;;  %v2031_v2 = vor.u32 %v2383_v63, %v2028_v0  ;;  %v2100_v6 = vld [vmem:[#allocation5 + $0xa8] sm:$0xf0]  ;;  %v2425_v7 = vld [vmem:[#allocation7 + $0x64] sm:$0xf]  ;;  %v2178_v13 = vld [vmem:[#allocation7 + $0x40] sm:$0xf] }
  0x68   : > { %1127 = vmatpush.bf16.msrb.mxu2 %v2063_v11  ;;  %v2103_v8 = vor.u32 %v2401_v5, %v2100_v6  ;;  %v2199_v10 = vor.u32 %v2425_v7, %v2196_v9  ;;  %v2381_v11 = vld [vmem:[#allocation5 + $0x4] sm:$0xf]  ;;  %v2422_v15 = vld [vmem:[#allocation7 + $0x44] sm:$0xf0]  ;;  %v2399_v17 = vld [vmem:[#allocation5 + $0x94] sm:$0xf] }
  0x69   : > { %1140 = vmatpush.bf16.msrb.mxu3 %v2127_v16  ;;  %v2179_v16 = vor.u32 %v2422_v15, %v2178_v13  ;;  %v2423_v20 = vld [vmem:[#allocation7 + $0x54] sm:$0xf]  ;;  %v2188_v21 = vld [vmem:[#allocation7 + $0x58] sm:$0xf0]  ;;  %v2397_v26 = vld [vmem:[#allocation5 + $0x84] sm:$0xf] }
  0x6a   : > { %1102 = vmatpush.bf16.msrb.mxu0 %v2051_v12  ;;  %v2020_v12 = vld [vmem:[#allocation5 + $0x8] sm:$0xf0]  ;;  %v2191_v22 = vor.u32 %v2423_v20, %v2188_v21  ;;  %v2421_v28 = vld [vmem:[#allocation7 + $0x44] sm:$0xf]  ;;  %v2162_v32 = vld [vmem:[#allocation7 + $0x20] sm:$0xf] }
  0x6b   : > { %1115 = vmatpush.bf16.msrb.mxu1 %v2115_v18  ;;  %v2023_v14 = vor.u32 %v2381_v11, %v2020_v12  ;;  %v2092_v18 = vld [vmem:[#allocation5 + $0x98] sm:$0xf0]  ;;  %v2419_v35 = vld [vmem:[#allocation7 + $0x34] sm:$0xf]  ;;  %v2154_v38 = vld [vmem:[#allocation7 + $0x10] sm:$0xf] }
  0x6c   : > { %1128 = vmatpush.bf16.msrb.mxu2 %v2055_v23  ;;  %v2095_v19 = vor.u32 %v2399_v17, %v2092_v18  ;;  %v2170_v23 = vld [vmem:[#allocation7 + $0x30] sm:$0xf]  ;;  %v2172_v36 = vld [vmem:[#allocation7 + $0x38] sm:$0xf0]  ;;  %v2417_v40 = vld [vmem:[#allocation7 + $0x24] sm:$0xf] }
  0x6d   : > { %1141 = vmatpush.bf16.msrb.mxu3 %v2119_v27  ;;  %v2084_v27 = vld [vmem:[#allocation5 + $0x88] sm:$0xf0]  ;;  %v2175_v37 = vor.u32 %v2419_v35, %v2172_v36  ;;  %v2414_v44 = vld [vmem:[#allocation7 + $0x4] sm:$0xf0]  ;;  %v2415_v46 = vld [vmem:[#allocation7 + $0x14] sm:$0xf] }
  0x6e   : > { %1103 = vmatpush.bf16.msrb.mxu0 %v2043_v24  ;;  %v2420_v24 = vld [vmem:[#allocation7 + $0x34] sm:$0xf0]  ;;  %v2087_v29 = vor.u32 %v2397_v26, %v2084_v27  ;;  %v2413_v50 = vld [vmem:[#allocation7 + $0x4] sm:$0xf]  ;;  %v2266_v57 = vld [vmem:[#allocation8 + $0x70] sm:$0xf] }
  0x6f   : > { %1116 = vmatpush.bf16.msrb.mxu1 %v2107_v30  ;;  %v2171_v25 = vor.u32 %v2420_v24, %v2170_v23  ;;  %v2180_v30 = vld [vmem:[#allocation7 + $0x48] sm:$0xf0]  ;;  %v2444_v61 = vld [vmem:[#allocation8 + $0x74] sm:$0xf0]  ;;  %v2443_v63 = vld [vmem:[#allocation8 + $0x74] sm:$0xf] }
  0x70   : > { %1129 = vmatpush.bf16.msrb.mxu2 %v2047_v33  ;;  %v2183_v31 = vor.u32 %v2421_v28, %v2180_v30  ;;  %v2418_v33 = vld [vmem:[#allocation7 + $0x24] sm:$0xf0]  ;;  %v2258_v0 = vld [vmem:[#allocation8 + $0x60] sm:$0xf]  ;;  %v2268_v3 = vld [vmem:[#allocation8 + $0x78] sm:$0xf0] }
  0x71   : > { %1142 = vmatpush.bf16.msrb.mxu3 %v2111_v60  ;;  %v2860_v60 = vmov 0   ;;  %v2442_v1 = vld [vmem:[#allocation8 + $0x64] sm:$0xf0]  ;;  %v2460_v5 = vld [vmem:[#allocation8 + $0xf4] sm:$0xf0]  ;;  %s3242_s2 = sld [smem:[#allocation30_spill]] }
  0x72   : > { %1104 = vmatpush.bf16.msrb.mxu0 %v2035_v34  ;;  %v2163_v34 = vor.u32 %v2418_v33, %v2162_v32  ;;  %2561 = vset.pattern.permute.xlu0 %v2860_v60  ;;  %v2259_v7 = vor.u32 %v2442_v1, %v2258_v0  ;;  %v2260_v15 = vld [vmem:[#allocation8 + $0x68] sm:$0xf0]  ;;  %v2332_v23 = vld [vmem:[#allocation8 + $0xf8] sm:$0xf0]  ;;  %s1885_s26 = sshll.u32 %s3042_s4, 2  ;;  %s3243_s1 = sld [smem:[#allocation29_spill]] }
  0x73   : > { %1117 = vmatpush.bf16.msrb.mxu1 %v2099_v39  ;;  %v2416_v39 = vld [vmem:[#allocation7 + $0x14] sm:$0xf0]  ;;  %v2250_v30 = vld [vmem:[#allocation8 + $0x50] sm:$0xf]  ;;  %v2439_v32 = vld [vmem:[#allocation8 + $0x54] sm:$0xf] }
  0x74   : > { %1130 = vmatpush.bf16.msrb.mxu2 %v2039_v42  ;;  %v2155_v41 = vor.u32 %v2416_v39, %v2154_v38  ;;  %v2164_v42 = vld [vmem:[#allocation7 + $0x28] sm:$0xf0]  ;;  %v2322_v36 = vld [vmem:[#allocation8 + $0xe0] sm:$0xf]  ;;  %v2457_v38 = vld [vmem:[#allocation8 + $0xe4] sm:$0xf] }
  0x75   : > { %1143 = vmatpush.bf16.msrb.mxu3 %v2103_v8  ;;  %v2167_v45 = vor.u32 %v2417_v40, %v2164_v42  ;;  %v2324_v40 = vld [vmem:[#allocation8 + $0xe8] sm:$0xf0]  ;;  %v2438_v42 = vld [vmem:[#allocation8 + $0x44] sm:$0xf0]  ;;  %v2306_v60 = vld [vmem:[#allocation8 + $0xc0] sm:$0xf] }
  0x76   : > { %1105 = vmatpush.bf16.msrb.mxu0 %v2027_v43  ;;  %v2146_v43 = vld [vmem:[#allocation7] sm:$0xf]  ;;  %v2308_v0 = vld [vmem:[#allocation8 + $0xc8] sm:$0xf0]  ;;  %s3244_s7 = sld [smem:[#allocation35_spill]]  ;;  %s3070_s14 = sand.u32 1, %s2844_s19  }
  0x77   : > { %1118 = vmatpush.bf16.msrb.mxu1 %v2091_v47  ;;  %v2156_v47 = vld [vmem:[#allocation7 + $0x18] sm:$0xf0]  ;;  %v2147_v48 = vor.u32 %v2414_v44, %v2146_v43  ;;  %s634_s23 = scalar_lea.vmem %s3242_s2, %s3045_s13  ;;  %v2327_v43 = vor.u32 %v2457_v38, %v2324_v40  ;;  %v2274_v38 = vld [vmem:[#allocation8 + $0x80] sm:$0xf]  ;;  %v2445_v40 = vld [vmem:[#allocation8 + $0x84] sm:$0xf] }
  0x78   : > { %1131 = vmatpush.bf16.msrb.mxu2 %v2031_v2  ;;  %v2159_v49 = vor.u32 %v2415_v46, %v2156_v47  ;;  %v1153_v13 = vld [vmem:[%s634_s23] sm:$0xff]  ;;  %s630_s6 = scalar_lea.vmem %s3243_s1, %s1885_s26  ;;  %v2244_v46 = vld [vmem:[#allocation8 + $0x48] sm:$0xf0]  ;;  %s3213_s15 = sshll.u32 %s3070_s14, 4 }
  0x79   : > { %1144 = vmatpush.bf16.msrb.mxu3 %v2095_v19  ;;  %s3075_s18 = scalar_lea.vmem [#allocation13], %s3213_s15  ;;  %s3212_s27 = sshll.u32 %s3070_s14, 3 }
  0x7a   : > { %1106 = vmatpush.bf16.msrb.mxu0 %v2019_v51  ;;  %v2148_v51 = vld [vmem:[#allocation7 + $0x8] sm:$0xf0]  ;;  %s600_s30 = scalar_lea.vmem [#allocation10], %s3212_s27  ;;  %s1561_s29 = scalar_lea.sflag [#allocation4], %s3070_s14 }
  0x7b   : > { %1119 = vmatpush.bf16.msrb.mxu1 %v2083_v53  ;;  %v2151_v53 = vor.u32 %v2413_v50, %v2148_v51  ;;  %v2455_v50 = vld [vmem:[#allocation8 + $0xd4] sm:$0xf]  ;;  %s1588_s26 = sshll.u32 %s600_s30, 4  ;;  %s2706_s21 = scalar_lea.hbm %s3197_s12, 16  ;;  %s1589_s26 = int_to_ptr.vmem [resolvable:$true] %s1588_s26 }
  0x7c   : > { %1132 = vmatpush.bf16.msrb.mxu2 %v2023_v14  ;;  %v2441_v14 = vld [vmem:[#allocation8 + $0x64] sm:$0xf] }
  0x7d   : > { %1145 = vmatpush.bf16.msrb.mxu3 %v2087_v29  ;;  %v2263_v21 = vor.u32 %v2441_v14, %v2260_v15  ;;  %v1164_v29 = vld [vmem:[%s630_s6] sm:$0xf]  ;;  %v2218_v14 = vld [vmem:[#allocation8 + $0x10] sm:$0xf]  ;;  %v2432_v15 = vld [vmem:[#allocation8 + $0x14] sm:$0xf0] }
  0x7e   : > { %1267 = vmatpush.bf16.msra.mxu0 %v2203_v52  ;;  %v672_v52 = vld [vmem:[%s3240_s5] sm:$0x3] }
  0x7f   : > { %1280 = vmatpush.bf16.msra.mxu1 %v2207_v62  ;;  %v674_v54 = vperm.slane %v672_v52, 0  ;;  %v2267_v62 = vor.u32 %v2444_v61, %v2266_v57  ;;  %v675_v6 = vperm.slane %v672_v52, 1  ;;  %v2316_v52 = vld [vmem:[#allocation8 + $0xd8] sm:$0xf0]  ;;  %v2454_v61 = vld [vmem:[#allocation8 + $0xc4] sm:$0xf0] }
  0x81   : > { %1495 = vmatpush.bf16.msra.mxu2 %v2267_v62  ;;  %v2453_v62 = vld [vmem:[#allocation8 + $0xc4] sm:$0xf] }
  0x82   : > { %1268 = vmatpush.bf16.msra.mxu0 %v2195_v56  ;;  %v1549_v56 = vld [vmem:[%s638_s25] sm:$0xff]  ;;  %v2311_v1 = vor.u32 %v2453_v62, %v2308_v0  ;;  %s2340_s25 = sshll.u32 %s2962_s22, 3 }
  0x83   : > { %1281 = vmatpush.bf16.msra.mxu1 %v2199_v10  ;;  %1554 = vperm.xlu0 %2561, %v1549_v56   ;;  %v2271_v10 = vor.u32 %v2443_v63, %v2268_v3  ;;  %v2435_v56 = vld [vmem:[#allocation8 + $0x34] sm:$0xf]  ;;  %v2307_v63 = vor.u32 %v2454_v61, %v2306_v60  ;;  %v2434_v3 = vld [vmem:[#allocation8 + $0x24] sm:$0xf0]  ;;  %s1586_s23 = scalar_lea.hbm %s3197_s12, %s2340_s25 }
  0x84   : > { %s1590_s24 = sshll.u32 %s1586_s23, 4  ;;  %s1591_s24 = int_to_ptr.hbm [resolvable:$true] %s1590_s24 }
  0x85   : > { %1496 = vmatpush.bf16.msra.mxu2 %v2259_v7  ;;  %s2700_s6 = sshra.s32 %s1591_s24, 4  ;;  %s2701_s6 = int_to_ptr.hbm [resolvable:$true] %s2700_s6 }
  0x86   : > { %1269 = vmatpush.bf16.msra.mxu0 %v2187_v4  ;;  %v2330_v4 = vld [vmem:[#allocation8 + $0xf0] sm:$0xf]  ;;  %s2702_s4 = scalar_lea.hbm %s2701_s6, 8  ;;  %p2707_p3 = scmp.lt.s32.totalorder %s2701_s6, %s3197_s12 }
  0x87   : > { %1282 = vmatpush.bf16.msra.mxu1 %v2191_v22  ;;  %v2331_v8 = vor.u32 %v2460_v5, %v2330_v4  ;;  %v2459_v22 = vld [vmem:[#allocation8 + $0xf4] sm:$0xf]  ;;  %v2433_v4 = vld [vmem:[#allocation8 + $0x24] sm:$0xf]  ;;  %p2703_p0 = scmp.ne.s32.totalorder %s2701_s6, %s2702_s4  ;;  %p2708_p4 = scmp.lt.s32.totalorder %s2706_s21, %s2702_s4 }
  0x89   : > { %1508 = vmatpush.bf16.msra.mxu3 %v2331_v8  ;;  %v2298_v8 = vld [vmem:[#allocation8 + $0xb0] sm:$0xf]  ;;  %p2704_p1 = pnand %p2703_p0, %p2981_p5  ;;  %p2709_p7 = por %p2708_p4, %p2707_p3 }
  0x8a   : > { %1270 = vmatpush.bf16.msra.mxu0 %v2179_v16 }
  0x8b   : > { %1283 = vmatpush.bf16.msra.mxu1 %v2183_v31  ;;  %1158 = vperm.xlu0 %2561, %v1153_v13   ;;  %v2440_v31 = vld [vmem:[#allocation8 + $0x54] sm:$0xf0]  ;;  %p2705_p2 = pneg %p2704_p1 }
  0x8c   : > { %v2251_v33 = vor.u32 %v2440_v31, %v2250_v30  ;;  %v2212_v30 = vld [vmem:[#allocation8 + $0x8] sm:$0xf0] }
  0x8d   : > { %p2710_p8 = pnand %p2709_p7, %p2705_p2 }
  0x8e   : > { %1271 = vmatpush.bf16.msra.mxu0 %v2171_v25  ;;  %v2335_v25 = vor.u32 %v2459_v22, %v2332_v23  ;;  %1497 = vmatpush.bf16.msra.mxu2 %v2251_v33  ;;  %v2449_v23 = vld [vmem:[#allocation8 + $0xa4] sm:$0xf]  ;;  %v2448_v33 = vld [vmem:[#allocation8 + $0x94] sm:$0xf0] }
  0x8f   : > { %1284 = vmatpush.bf16.msra.mxu1 %v2175_v37  ;;  %v2458_v37 = vld [vmem:[#allocation8 + $0xe4] sm:$0xf0] }
  0x90   : > { %v2323_v39 = vor.u32 %v2458_v37, %v2322_v36  ;;  %v2284_v36 = vld [vmem:[#allocation8 + $0x98] sm:$0xf0] }
  0x92   : > { %1272 = vmatpush.bf16.msra.mxu0 %v2163_v34  ;;  %v2252_v34 = vld [vmem:[#allocation8 + $0x58] sm:$0xf0]  ;;  %1509 = vmatpush.bf16.msra.mxu3 %v2323_v39  ;;  %v2446_v39 = vld [vmem:[#allocation8 + $0x84] sm:$0xf0] }
  0x93   : > { %1285 = vmatpush.bf16.msra.mxu1 %v2167_v45  ;;  %v2255_v35 = vor.u32 %v2439_v32, %v2252_v34  ;;  %v2437_v45 = vld [vmem:[#allocation8 + $0x44] sm:$0xf]  ;;  %v2282_v32 = vld [vmem:[#allocation8 + $0x90] sm:$0xf] }
  0x94   : > { %v2247_v47 = vor.u32 %v2437_v45, %v2244_v46  ;;  %v2283_v34 = vor.u32 %v2448_v33, %v2282_v32 }
  0x96   : > { %1273 = vmatpush.bf16.msra.mxu0 %v2155_v41  ;;  %v2242_v41 = vld [vmem:[#allocation8 + $0x40] sm:$0xf] }
  0x97   : > { %1286 = vmatpush.bf16.msra.mxu1 %v2159_v49  ;;  %v2243_v44 = vor.u32 %v2438_v42, %v2242_v41  ;;  %v2456_v49 = vld [vmem:[#allocation8 + $0xd4] sm:$0xf0]  ;;  %v2275_v41 = vor.u32 %v2446_v39, %v2274_v38  ;;  %v2276_v42 = vld [vmem:[#allocation8 + $0x88] sm:$0xf0] }
  0x99   : > { %1498 = vmatpush.bf16.msra.mxu2 %v2243_v44  ;;  %v933_v44 = vld [vmem:[%s3244_s7] sm:$0x3] }
  0x9a   : > { %1274 = vmatpush.bf16.msra.mxu0 %v2147_v48  ;;  %v2314_v48 = vld [vmem:[#allocation8 + $0xd0] sm:$0xf]  ;;  %v935_v45 = vperm.slane %v933_v44, 0 }
  0x9b   : > { %1287 = vmatpush.bf16.msra.mxu1 %v2151_v53  ;;  %v2315_v51 = vor.u32 %v2456_v49, %v2314_v48  ;;  %v2319_v53 = vor.u32 %v2455_v50, %v2316_v52  ;;  %v936_v48 = vperm.slane %v933_v44, 1 }
  0x9d   : > { %1510 = vmatpush.bf16.msra.mxu3 %v2315_v51 }
  0xa1   : > { %1511 = vmatpush.bf16.msra.mxu3 %v2307_v63 }
  0xda   : > { %v854_v55 = vpop.f32.mrf.mxu0 }
  0xdb   : > { %v855_v58 = vadd.f32 %v854_v55, %v674_v54  ;;  %v867_v59 = vpop.f32.mrf.mxu1  ;;  %v2234_v54 = vld [vmem:[#allocation8 + $0x30] sm:$0xf]  ;;  %v2436_v55 = vld [vmem:[#allocation8 + $0x34] sm:$0xf0] }
  0xdc   : > { %v2235_v57 = vor.u32 %v2436_v55, %v2234_v54  ;;  %v1181_v54 = vld [vmem:[%s3194_s9] sm:$0x3] }
  0xdd   : > { %v868_v2 = vadd.f32 %v867_v59, %v855_v58  ;;  %v2236_v58 = vld [vmem:[#allocation8 + $0x38] sm:$0xf0] }
  0xde   : > { %v2239_v59 = vor.u32 %v2435_v56, %v2236_v58  ;;  %1499 = vmatpush.bf16.msra.mxu2 %v2235_v57  ;;  %v1183_v57 = vperm.slane %v1181_v54, 0 }
  0xdf   : > { %v897_v9 = vmax.f32 %v868_v2, 0.0  ;;  %v2226_v2 = vld [vmem:[#allocation8 + $0x20] sm:$0xf] }
  0xe0   : > { %v2227_v5 = vor.u32 %v2434_v3, %v2226_v2 }
  0xe1   : > { %v899_v11 = vpack.c.bf16 %v897_v9, %v897_v9  ;;  %v2452_v9 = vld [vmem:[#allocation8 + $0xb4] sm:$0xf0] }
  0xe2   : > { %v880_v12 = vpop.f32.mrf.mxu2  ;;  %v856_v18 = vpop.f32.mrf.mxu0  ;;  %1500 = vmatpush.bf16.msra.mxu2 %v2227_v5 }
  0xe3   : > { %v881_v16 = vadd.f32 %v880_v12, %v675_v6  ;;  %v893_v17 = vpop.f32.mrf.mxu3  ;;  %v869_v19 = vpop.f32.mrf.mxu1  ;;  %1107 = vmatmul.bf16.vlgmr.msrb.gmra.mxu0 %v899_v11  ;;  %1133 = vmatmul.bf16.vlgmr.msrb.gmra.mxu2 %v899_v11  ;;  %v2228_v6 = vld [vmem:[#allocation8 + $0x28] sm:$0xf0]  ;;  %v2299_v11 = vor.u32 %v2452_v9, %v2298_v8  ;;  %v2300_v12 = vld [vmem:[#allocation8 + $0xb8] sm:$0xf0] }
  0xe4   : > { %1521 = vmatpush.bf16.msrb.mxu0 %v2271_v10  ;;  %v2231_v7 = vor.u32 %v2433_v4, %v2228_v6  ;;  %v2451_v10 = vld [vmem:[#allocation8 + $0xb4] sm:$0xf]  ;;  %v2220_v18 = vld [vmem:[#allocation8 + $0x18] sm:$0xf0] }
  0xe5   : > { %v894_v20 = vadd.f32 %v893_v17, %v881_v16  ;;  %v2303_v13 = vor.u32 %v2451_v10, %v2300_v12  ;;  %v2431_v16 = vld [vmem:[#allocation8 + $0x14] sm:$0xf]  ;;  %1512 = vmatpush.bf16.msra.mxu3 %v2299_v11  ;;  %v2219_v17 = vor.u32 %v2432_v15, %v2218_v14 }
  0xe6   : > { %v2223_v19 = vor.u32 %v2431_v16, %v2220_v18 }
  0xe7   : > { %v898_v24 = vmax.f32 %v894_v20, 0.0  ;;  %v2290_v20 = vld [vmem:[#allocation8 + $0xa0] sm:$0xf]  ;;  %1501 = vmatpush.bf16.msra.mxu2 %v2219_v17 }
  0xe8   : > { %1522 = vmatpush.bf16.msrb.mxu0 %v2263_v21  ;;  %v2450_v21 = vld [vmem:[#allocation8 + $0xa4] sm:$0xf0] }
  0xe9   : > { %v900_v26 = vpack.c.bf16 %v898_v24, %v898_v24  ;;  %v2291_v22 = vor.u32 %v2450_v21, %v2290_v20  ;;  %v2292_v24 = vld [vmem:[#allocation8 + $0xa8] sm:$0xf0] }
  0xea   : > { %v882_v27 = vpop.f32.mrf.mxu2 }
  0xeb   : > { %v895_v28 = vpop.f32.mrf.mxu3  ;;  %1120 = vmatmul.bf16.vlgmr.msrb.gmra.mxu1 %v900_v26  ;;  %1146 = vmatmul.bf16.vlgmr.msrb.gmra.mxu3 %v900_v26  ;;  %v2210_v26 = vld [vmem:[#allocation8] sm:$0xf]  ;;  %v2430_v27 = vld [vmem:[#allocation8 + $0x4] sm:$0xf0] }
  0xec   : > { %1534 = vmatpush.bf16.msrb.mxu1 %v2335_v25  ;;  %1523 = vmatpush.bf16.msrb.mxu0 %v2255_v35  ;;  %v2295_v25 = vor.u32 %v2449_v23, %v2292_v24  ;;  %v2429_v28 = vld [vmem:[#allocation8 + $0x4] sm:$0xf]  ;;  %v2447_v35 = vld [vmem:[#allocation8 + $0x94] sm:$0xf] }
  0xed   : > { %1513 = vmatpush.bf16.msra.mxu3 %v2291_v22  ;;  %v2215_v31 = vor.u32 %v2429_v28, %v2212_v30  ;;  %v2287_v37 = vor.u32 %v2447_v35, %v2284_v36 }
  0xf0   : > { %1535 = vmatpush.bf16.msrb.mxu1 %v2327_v43  ;;  %1524 = vmatpush.bf16.msrb.mxu0 %v2247_v47  ;;  %v2279_v43 = vor.u32 %v2445_v40, %v2276_v42 }
  0xf1   : > { %1514 = vmatpush.bf16.msra.mxu3 %v2283_v34 }
  0xf3   : > { %1275 = vmatmul.bf16.vlgmr.msra.gmra.mxu0 %v1164_v29 }
  0xf4   : > { %1536 = vmatpush.bf16.msrb.mxu1 %v2319_v53  ;;  %1525 = vmatpush.bf16.msrb.mxu0 %v2239_v59 }
  0xf5   : > { %1515 = vmatpush.bf16.msra.mxu3 %v2275_v41  ;;  %v3081_v55 = vpop.permute.xlu0 %1554 }
  0xf8   : > { %1537 = vmatpush.bf16.msrb.mxu1 %v2311_v1  ;;  %1526 = vmatpush.bf16.msrb.mxu0 %v2231_v7  ;;  %v1184_v1 = vperm.slane %v1181_v54, 1 }
  0xfb   : > { %1288 = vmatmul.bf16.vlgmr.msra.gmra.mxu1 %v1164_v29  ;;  %v2211_v29 = vor.u32 %v2430_v27, %v2210_v26 }
  0xfc   : > { %1538 = vmatpush.bf16.msrb.mxu1 %v2303_v13  ;;  %1527 = vmatpush.bf16.msrb.mxu0 %v2223_v19 }
  0xfd   : > { %1502 = vmatpush.bf16.msra.mxu2 %v2211_v29  ;;  %v1159_v4 = vpop.permute.xlu0 %1158 }
 0x100   : > { %1539 = vmatpush.bf16.msrb.mxu1 %v2295_v25  ;;  %1528 = vmatpush.bf16.msrb.mxu0 %v2215_v31 }
 0x104   : > { %1540 = vmatpush.bf16.msrb.mxu1 %v2287_v37 }
 0x108   : > { %1541 = vmatpush.bf16.msrb.mxu1 %v2279_v43 }
 0x160   : > { %v1108_v46 = vpop.f32.mrf.mxu0 }
 0x161   : > { %v1109_v47 = vadd.f32 %v1108_v46, %v935_v45 }
 0x166   : > { %v1134_v49 = vpop.f32.mrf.mxu2 }
 0x167   : > { %v1135_v53 = vadd.f32 %v1134_v49, %v936_v48 }
 0x168   : > { %v1121_v50 = vpop.f32.mrf.mxu1  ;;  %v1110_v52 = vpop.f32.mrf.mxu0 }
 0x169   : > { %v1122_v51 = vadd.f32 %v1121_v50, %v1109_v47 }
 0x16b   : > { %1151 = vst [vmem:[%s3075_s18] sm:$0xff] %v1122_v51 }
 0x16e   : > { %v1147_v56 = vpop.f32.mrf.mxu3  ;;  %v1136_v59 = vpop.f32.mrf.mxu2 }
 0x16f   : > { %v1148_v58 = vadd.f32 %v1147_v56, %v1135_v53 }
 0x170   : > { %v1123_v60 = vpop.f32.mrf.mxu1  ;;  %v1276_v62 = vpop.f32.mrf.mxu0 }
 0x171   : > { %1152 = vst [vmem:[%s3075_s18 + $0x8] sm:$0xff] %v1148_v58  ;;  %v1154_v61 = vmul.f32 1.442695, %v1148_v58  ;;  %v1277_v63 = vadd.f32 %v1276_v62, %v1183_v57 }
 0x173   : > { %2562 = vpow2.f32 %v1154_v61  ;;  %v1293_v0 = vmax.f32 %v1277_v63, 0.0 }
 0x175   : > { %v1295_v2 = vpack.c.bf16 %v1293_v0, %v1293_v0 }
 0x176   : > { %v1149_v3 = vpop.f32.mrf.mxu3 }
 0x177   : > { %1503 = vmatmul.bf16.vlgmr.msra.gmra.mxu2 %v1295_v2  ;;  %1529 = vmatmul.bf16.vlgmr.msrb.gmra.mxu0 %v1295_v2 }
 0x178   : > { %v1289_v5 = vpop.f32.mrf.mxu1  ;;  %v1278_v8 = vpop.f32.mrf.mxu0 }
 0x179   : > { %v2563_v6 = vpop.eup %2562  ;;  %v1290_v7 = vadd.f32 %v1289_v5, %v1184_v1 }
 0x17a   : > { %v1161_v9 = vmul.f32 %v2563_v6, %v1159_v4 }
 0x17b   : > { %v1294_v10 = vmax.f32 %v1290_v7, 0.0 }
 0x17c   : > { %v1162_v11 = vadd.f32 %v1161_v9, %v1122_v51 }
 0x17d   : > { %v1296_v12 = vpack.c.bf16 %v1294_v10, %v1294_v10 }
 0x17e   : > { %1163 = vst [vmem:[%s600_s30] sm:$0xff] %v1162_v11 }
 0x17f   : > { %1516 = vmatmul.bf16.vlgmr.msra.gmra.mxu3 %v1296_v12  ;;  %1542 = vmatmul.bf16.vlgmr.msrb.gmra.mxu1 %v1296_v12 }
 0x180   : > { %v1291_v13 = vpop.f32.mrf.mxu1 }
 0x181   : > { %2713 = shalt.err (!%p2710_p8)
}
 0x182   : > { %2479 = dma.vmem_to_hbm [thread:$0]  (%p2981_p5), %s1589_s26, 128, %s1591_s24, %s1561_s29   ;;  %v1329_v14 = vld [vmem:[%s3196_s11] sm:$0x3] }
 0x183   : > { %v1332_v15 = vperm.slane %v1329_v14, 1  ;;  %s2461_s17 = sshll.u32 %s2962_s22, 4  ;;  %v1331_v18 = vperm.slane %v1329_v14, 0  ;;  %s3245_s23 = sld [smem:[#allocation39_spill]] }
 0x184   : > { %s3246_s26 = sshll.u32 %s3070_s14, 4  ;;  %s3247_s21 = sld [smem:[#allocation37_spill]] }
 0x185   : > { %s621_s24 = scalar_lea.vmem [#allocation14], %s3246_s26  ;;  %s1565_s15 = sand.u32 1, %s2962_s22  }
 0x186   : > { %s1632_s29 = sshll.u32 %s621_s24, 4  ;;  %s3249_s0 = sld [smem:[#allocation38_spill]]  ;;  %s1633_s29 = int_to_ptr.vmem [resolvable:$true] %s1632_s29 }
 0x189   : > { %s1630_s6 = scalar_lea.hbm %s3245_s23, %s2461_s17  ;;  %s2734_s8 = scalar_lea.hbm %s3245_s23, 32 }
 0x18a   : > { %s1634_s4 = sshll.u32 %s1630_s6, 4  ;;  %s3248_s30 = smov %s3247_s21  ;;  %s1635_s4 = int_to_ptr.hbm [resolvable:$true] %s1634_s4 }
 0x18b   : > { %s1600_s16 = scalar_lea.hbm %s3247_s21, %s2340_s25  ;;  %s1576_s6 = scalar_lea.sflag [#allocation15], %s3070_s14 }
 0x18c   : > { %s1615_s1 = scalar_lea.hbm %s3249_s0, %s2461_s17  ;;  %s2728_s2 = sshra.s32 %s1635_s4, 4  ;;  %s2729_s2 = int_to_ptr.hbm [resolvable:$true] %s2728_s2 }
 0x18d   : > { %s2730_s3 = scalar_lea.hbm %s2729_s2, 16  ;;  %p2735_p12 = scmp.lt.s32.totalorder %s2729_s2, %s3245_s23 }
 0x18e   : > { %p2731_p9 = scmp.ne.s32.totalorder %s2729_s2, %s2730_s3  ;;  %p2736_p13 = scmp.lt.s32.totalorder %s2734_s8, %s2730_s3 }
 0x190   : > { %p2732_p10 = pnand %p2731_p9, %p2981_p5  ;;  %p2737_p0 = por %p2736_p13, %p2735_p12 }
 0x192   : > { %p2733_p11 = pneg %p2732_p10 }
 0x194   : > { %p2738_p1 = pnand %p2737_p0, %p2733_p11 }
 0x1f4   : > { %v1530_v16 = vpop.f32.mrf.mxu0 }
 0x1f5   : > { %v1531_v17 = vadd.f32 %v1530_v16, %v1332_v15 }
 0x1fa   : > { %v1504_v19 = vpop.f32.mrf.mxu2 }
 0x1fb   : > { %v1505_v23 = vadd.f32 %v1504_v19, %v1331_v18 }
 0x1fc   : > { %v1543_v20 = vpop.f32.mrf.mxu1  ;;  %v1532_v22 = vpop.f32.mrf.mxu0 }
 0x1fd   : > { %v1544_v21 = vadd.f32 %v1543_v20, %v1531_v17 }
 0x1ff   : > { %1548 = vst [vmem:[%s621_s24 + $0x8] sm:$0xff] %v1544_v21  ;;  %v1550_v24 = vmul.f32 1.442695, %v1544_v21 }
 0x201   : > { %2564 = vpow2.f32 %v1550_v24 }
 0x202   : > { %v1517_v25 = vpop.f32.mrf.mxu3  ;;  %v1506_v27 = vpop.f32.mrf.mxu2 }
 0x203   : > { %v1518_v26 = vadd.f32 %v1517_v25, %v1505_v23 }
 0x204   : > { %v1545_v28 = vpop.f32.mrf.mxu1 }
 0x205   : > { %1547 = vst [vmem:[%s621_s24] sm:$0xff] %v1518_v26 }
 0x206   : > { %2741 = shalt.err (!%p2738_p1)
}
 0x207   : > { %2482 = dma.vmem_to_hbm [thread:$0]  (%p2981_p5), %s1633_s29, 256, %s1635_s4, %s1576_s6   ;;  %v2565_v29 = vpop.eup %2564 }
 0x208   : > { %s3250_s17 = sshll.u32 %s3070_s14, 3  ;;  %s1604_s5 = sshll.u32 %s1600_s16, 4  ;;  %v1557_v30 = vmul.f32 %v2565_v29, %v3081_v55  ;;  %s1605_s5 = int_to_ptr.hbm [resolvable:$true] %s1604_s5 }
 0x209   : > { %s607_s24 = scalar_lea.vmem [#allocation11], %s3250_s17  ;;  %s1617_s7 = sshll.u32 %s3075_s18, 4  ;;  %s3137_s7 = int_to_ptr.vmem [resolvable:$true] %s1617_s7 }
 0x20a   : > { %s1602_s20 = sshll.u32 %s607_s24, 4  ;;  %s1619_s2 = sshll.u32 %s1615_s1, 4  ;;  %v1558_v31 = vadd.f32 %v1557_v30, %v1518_v26  ;;  %v1519_v32 = vpop.f32.mrf.mxu3  ;;  %s1603_s20 = int_to_ptr.vmem [resolvable:$true] %s1602_s20  ;;  %s3139_s2 = int_to_ptr.hbm [resolvable:$true] %s1619_s2 }
 0x20b   : > { %s1566_s3 = scalar_lea.sflag [#allocation12], %s1565_s15  ;;  %s2756_s8 = sshra.s32 %s1605_s5, 4  ;;  %s2757_s8 = int_to_ptr.hbm [resolvable:$true] %s2756_s8 }
 0x20c   : > { %1559 = vst [vmem:[%s607_s24] sm:$0xff] %v1558_v31  ;;  %s2758_s14 = scalar_lea.hbm %s2757_s8, 8  ;;  %s2762_s29 = scalar_lea.hbm %s3248_s30, 16 }
 0x20d   : > { %p2759_p2 = scmp.ne.s32.totalorder %s2757_s8, %s2758_s14  ;;  %p2763_p7 = scmp.lt.s32.totalorder %s2757_s8, %s3248_s30 }
 0x20e   : > { %p2764_p8 = scmp.lt.s32.totalorder %s2762_s29, %s2758_s14 }
 0x20f   : > { %p2760_p3 = pnand %p2759_p2, %p2981_p5 }
 0x210   : > { %p2765_p9 = por %p2764_p8, %p2763_p7 }
 0x211   : > { %p2761_p4 = pneg %p2760_p3 }
 0x213   : > { %p2766_p10 = pnand %p2765_p9, %p2761_p4 }
 0x215   : > { %2769 = shalt.err (!%p2766_p10)
}
 0x216   : > { %2480 = dma.vmem_to_hbm [thread:$0]  (%p2981_p5), %s1603_s20, 128, %s1605_s5, %s1566_s3  }
 0x217   : > { %s2784_s22 = sshra.s32 %s3139_s2, 4  ;;  %s2790_s26 = scalar_lea.hbm %s3249_s0, 32  ;;  %s2785_s22 = int_to_ptr.hbm [resolvable:$true] %s2784_s22 }
 0x218   : > { %s2786_s16 = scalar_lea.hbm %s2785_s22, 16  ;;  %p2791_p0 = scmp.lt.s32.totalorder %s2785_s22, %s3249_s0 }
 0x219   : > { %p2787_p11 = scmp.ne.s32.totalorder %s2785_s22, %s2786_s16  ;;  %p2792_p1 = scmp.lt.s32.totalorder %s2790_s26, %s2786_s16 }
 0x21b   : > { %p2788_p12 = pnand %p2787_p11, %p2981_p5  ;;  %p2793_p2 = por %p2792_p1, %p2791_p0 }
 0x21d   : > { %p2789_p13 = pneg %p2788_p12 }
 0x21f   : > { %p2794_p3 = pnand %p2793_p2, %p2789_p13 }
 0x221   : > { %2797 = shalt.err (!%p2794_p3)
}
 0x222   : > { %2481 = dma.vmem_to_hbm [thread:$0]  (%p2981_p5), %s3137_s7, 256, %s3139_s2, %s1566_s3  }
 0x223 PF: > { %s3251_s25 = sld [smem:[#allocation24_spill]] }
 0x224   : > { %s3252_s17 = sld [smem:[#allocation22_spill]] }
 0x229   : > { %p2521_p4 = scmp.ge.s32.totalorder %s3251_s25, 2 }
 0x22a   : > { %s1646_s20 = sand.u32 1, %s3252_s17  }
 0x22b   : > { %p2501_p7 = pnand %p2521_p4, %p2985_p6  ;;  %s1647_s5 = scalar_lea.sflag [#allocation4], %s1646_s20 }
 0x22d   : > { %p2502_p8 = pneg %p2501_p7 }
 0x22f   : > { %2827 = dma.done.wait (%p2502_p8), %s1647_s5, 128  }
 0x230   : > { %2829 = vsyncadd (%p2502_p8), %s1647_s5, 4294967168  ;;  %s3254_s8 = sadd.s32 4294967294, %s3251_s25  }
 0x231   : > { %s1656_s14 = sand.u32 1, %s3254_s8  }
 0x232   : > { %s1657_s18 = scalar_lea.sflag [#allocation12], %s1656_s14 }
 0x233   : > { %2831 = dma.done.wait (%p2502_p8), %s1657_s18, 384  }
 0x234   : > { %2833 = vsyncadd (%p2502_p8), %s1657_s18, 4294966912  ;;  %s1677_s28 = scalar_lea.sflag [#allocation15], %s1646_s20 }
 0x235   : > { %2835 = dma.done.wait (%p2502_p8), %s1677_s28, 256  }
 0x236   : > { %2837 = vsyncadd (%p2502_p8), %s1677_s28, 4294967040  ;;  %s3255_s21 = sld [smem:[#allocation25_spill]]  ;;  %s3258_s18 = smov %s2844_s19 }
 0x237   : > { %s3256_s7 = sld [smem:[#allocation23_spill]] }
 0x238   : > { %s3257_s20 = sld [smem:[#allocation26_spill]] }
 0x23c   : > { %p35_p5 = scmp.ge.s32.totalorder %s3255_s21, 4  }
 0x23d   : > { %s3259_s19 = smov %s3256_s7 }
 0x23e   :  { %37 = sbr.rel (!%p35_p5) target bundleno = 23 (0x17), region = 178 }
 0x243   :  { %1683 = vsyncpa [#allocation3], 1 }
 0x244   :  { %1685 = vsyncpa [#allocation3 + $0x1], 1 }
 0x245   :  { %1686 = vsyncpa [#allocation6], 1 }
 0x246   :  { %1687 = vsyncpa [#allocation9], 1 }
 0x247   :  { %1688 = vsyncpa [#allocation4], 1 }
 0x248   :  { %1690 = vsyncpa [#allocation4 + $0x1], 1 }
 0x249   :  { %1691 = vsyncpa [#allocation12], 1 }
 0x24a   :  { %1693 = vsyncpa [#allocation12 + $0x1], 1 }
 0x24b   :  { %1694 = vsyncpa [#allocation15], 1 }
 0x24c   :  { %1696 = vsyncpa [#allocation15 + $0x1], 1 }

</bundles_post_ra>
